<compile_context>
chip_gen: v5e
topology: v5e:2x2
jax: 0.10.0
libtpu: 0.0.40
codegen_flags: <defaults>
</compile_context>

<pallas_src>
import functools

import jax
import jax.numpy as jnp
from jax import lax
from jax.experimental import pallas as pl
from jax.experimental.pallas import tpu as pltpu


def _silu(v):
    # Exact SiLU: sigmoid(v) = 0.5*(tanh(v/2)+1). Single EUP op per element.
    return v * (0.5 * jnp.tanh(0.5 * v) + 0.5)


def _conv1d_same(x3, w, bias, *, K, L):
    # x3: (TB, L, Cin) f32; w: (K, Cin, Cout) in conv dtype; bias: (1, Cout) f32.
    # 'same' padding (odd K). K accumulating MXU matmuls over sublane-shifted views
    # of the zero-padded buffer (no K-wide lane concat, no im2col peak).
    TB, _, Cin = x3.shape
    Cout = w.shape[-1]
    pad = (K - 1) // 2
    zp = jnp.zeros((TB, pad, Cin), x3.dtype)
    xp = jnp.concatenate([zp, x3, zp], axis=1)              # (TB, L+K-1, Cin)
    acc = jnp.zeros((TB * L, Cout), jnp.float32)
    for k in range(K):
        lhs = xp[:, k:k + L, :].reshape(TB * L, Cin).astype(w.dtype)
        acc = acc + jnp.dot(lhs, w[k], preferred_element_type=jnp.float32)
    acc = acc + bias
    return acc.reshape(TB, L, Cout)


def _group_norm(h3, gmat, gmatt, gamma, beta, *, L, cpg, eps=1e-5):
    # h3: (TB, L, C); gmat: (C, G) one-hot group assignment; gmatt: (G, C);
    # gamma/beta: (1, C). Two-pass (subtract-mean) variance for numerical safety,
    # per-group stats gathered/scattered with tiny one-hot matmuls.
    # Epilogue folded: d * (gamma*rstd) + beta  ->  2 full-tensor VALU ops.
    n = float(L * cpg)
    s1 = jnp.sum(h3, axis=1)                                             # (TB, C)
    mean_g = jnp.dot(s1, gmat, preferred_element_type=jnp.float32) / n   # (TB, G)
    mean_c = jnp.dot(mean_g, gmatt,
                     preferred_element_type=jnp.float32)[:, None, :]     # (TB,1,C)
    d = h3 - mean_c
    s2 = jnp.sum(d * d, axis=1)                                          # (TB, C)
    var_g = jnp.dot(s2, gmat, preferred_element_type=jnp.float32) / n
    var_c = jnp.dot(var_g, gmatt,
                    preferred_element_type=jnp.float32)[:, None, :]      # (TB,1,C)
    scale = gamma * lax.rsqrt(var_c + eps)                               # (TB,1,C)
    return d * scale + beta


def middle_block_kernel(xc_ref, film_ref, w1_ref, w2_ref, par_ref,
                        gmat_ref, gmatt_ref, o_ref,
                        *, K, L, C, Cin1, cpg, TB, lane_dense):
    xc = xc_ref[...]          # (TB, L, Cin1) = concat(x, time_cond); x is lanes [:C]
    film = film_ref[...]      # (TB, 2, C) fused FiLM (mult, add)
    gmat = gmat_ref[...]      # (C, G)
    gmatt = gmatt_ref[...]    # (G, C)
    par = par_ref[...]        # (6, C): b1, g1g, g1b, b2, g2g, g2b
    w1 = w1_ref[...]          # (K, Cin1, C) conv dtype
    w2 = w2_ref[...]          # (K, C, C)    conv dtype

    b1, g1g, g1b = par[0:1], par[1:2], par[2:3]
    b2, g2g, g2b = par[3:4], par[4:5], par[5:6]

    # conv1 -> gn1 -> SiLU
    h = _conv1d_same(xc, w1, b1, K=K, L=L)
    h = _group_norm(h, gmat, gmatt, g1g, g1b, L=L, cpg=cpg)
    h = _silu(h)

    # FiLM (time & cond MLPs hoisted to the wrapper, folded into one mult/add)
    h = h * film[:, 0:1, :] + film[:, 1:2, :]

    # SiLU -> conv2 -> gn2 -> SiLU -> residual add (residual = first C lanes of xc)
    h = _silu(h)
    h = _conv1d_same(h, w2, b2, K=K, L=L)
    h = _group_norm(h, gmat, gmatt, g2g, g2b, L=L, cpg=cpg)
    h = _silu(h)
    out = h + xc[:, :, :C]

    if lane_dense:
        o_ref[...] = out.reshape(TB, L * C)      # lane-dense slab: unmasked stores
    else:
        o_ref[...] = out


def middle_block_1d(x, time_cond, t_in, zsem, params, *, K, G,
                    conv_dtype=jnp.bfloat16):
    B, L, C = x.shape
    cpg = C // G
    Cin1 = C + time_cond.shape[-1]

    # --- hoisted FiLM MLPs (whole-batch, plain JAX) ---
    silu = lambda v: v * jax.nn.sigmoid(v)
    th = silu(t_in @ params["tw1"] + params["tb1"])
    tm = th @ params["tw2m"] + params["tb2m"]
    ta = th @ params["tw2a"] + params["tb2a"]
    zh = silu(zsem @ params["cw1"] + params["cb1"])
    zm = zh @ params["cw2m"] + params["cb2m"]
    za = zh @ params["cw2a"] + params["cb2a"]
    # (h*tm + ta)*zm + za == h*(tm*zm) + (ta*zm + za)
    film = jnp.stack([tm * zm, ta * zm + za], axis=1)        # (B, 2, C)

    # --- input / parameter plumbing ---
    xc = jnp.concatenate([x, time_cond], axis=-1)            # (B, L, Cin1)
    w1 = params["w1"].astype(conv_dtype)                     # (K, Cin1, C)
    w2 = params["w2"].astype(conv_dtype)                     # (K, C, C)
    par = jnp.concatenate([params["b1"], params["g1g"], params["g1b"],
                           params["b2"], params["g2g"], params["g2b"]],
                          axis=0)                            # (6, C)
    gmat = jax.nn.one_hot(jnp.arange(C) // cpg, G, dtype=jnp.float32)   # (C, G)
    gmatt = gmat.T                                           # (G, C)

    # Batch elements per grid step: target ~512 MXU rows (TB*L); pad B to a tb
    # multiple instead of shrinking tb (no odd-B performance cliff).
    tb = max(1, min(B, max(1, 512 // max(L, 1))))
    Bp = pl.cdiv(B, tb) * tb

    def pad_b(a):
        if a.shape[0] == Bp:
            return a
        return jnp.pad(a, [(0, Bp - a.shape[0])] + [(0, 0)] * (a.ndim - 1))

    xc_p, film_p = pad_b(xc), pad_b(film)
    grid = (Bp // tb,)

    lane_dense = (C % 128 != 0) and ((L * C) % 128 == 0)

    # --- explicit VMEM budget (blocks + in-kernel intermediates, with headroom) ---
    f32b, wb = 4, jnp.dtype(conv_dtype).itemsize
    block_bytes = (2 * tb * L * Cin1 * f32b          # xc (double-buffered)
                   + 2 * tb * 2 * C * f32b           # film
                   + (K * Cin1 * C + K * C * C) * wb # weights (single-buffered)
                   + (6 * C + 2 * C * G) * f32b      # par / gmat / gmatt
                   + 2 * tb * L * C * f32b)          # out
    interm_bytes = tb * (L + K - 1) * Cin1 * f32b + 6 * tb * L * C * f32b
    vmem_limit = int(min(64 << 20, max(32 << 20, 4 * (block_bytes + interm_bytes))))

    def _run(use_buffered, use_lane_dense):
        def batched(shape):
            nd = len(shape)
            return pl.BlockSpec((tb,) + tuple(shape[1:]),
                                lambda b, _n=nd: (b,) + (0,) * (_n - 1))

        def const(shape):
            nd = len(shape)
            if use_buffered:
                return pl.BlockSpec(tuple(shape), lambda b, _n=nd: (0,) * _n,
                                    pipeline_mode=pl.Buffered(1))
            return pl.BlockSpec(tuple(shape), lambda b, _n=nd: (0,) * _n)

        if use_lane_dense:
            out_shape = jax.ShapeDtypeStruct((Bp, L * C), jnp.float32)
            out_spec = pl.BlockSpec((tb, L * C), lambda b: (b, 0))
        else:
            out_shape = jax.ShapeDtypeStruct((Bp, L, C), jnp.float32)
            out_spec = pl.BlockSpec((tb, L, C), lambda b: (b, 0, 0))

        kernel = functools.partial(middle_block_kernel, K=K, L=L, C=C, Cin1=Cin1,
                                   cpg=cpg, TB=tb, lane_dense=use_lane_dense)
        out = pl.pallas_call(
            kernel,
            out_shape=out_shape,
            grid_spec=pltpu.PrefetchScalarGridSpec(
                num_scalar_prefetch=0,
                grid=grid,
                in_specs=[batched(xc_p.shape), batched(film_p.shape),
                          const(w1.shape), const(w2.shape),
                          const(par.shape), const(gmat.shape), const(gmatt.shape)],
                out_specs=out_spec,
            ),
            compiler_params=pltpu.CompilerParams(
                dimension_semantics=("parallel",),
                vmem_limit_bytes=vmem_limit),
        )(xc_p, film_p, w1, w2, par, gmat, gmatt)
        out = jax.block_until_ready(out)
        if use_lane_dense:
            out = out.reshape(Bp, L, C)
        return out[:B]

    try:
        return _run(True, lane_dense)
    except Exception:
        # TODO(synk): drop this conservative fallback once pipeline_mode=pl.Buffered(1)
        #             and the lane-dense output reshape are confirmed on all target
        #             TPU generations.
        return _run(False, False)


def ref_forward(x, time_cond, t_in, zsem, params, K, G):
    # Pure-JAX reference mirroring ConvBlock1D semantics (channels-last layout).
    B, L, C = x.shape
    cpg = C // G

    def conv1d(h, w, b):
        pad = (K - 1) // 2
        hp = jnp.pad(h, ((0, 0), (pad, pad), (0, 0)))
        out = jnp.broadcast_to(b, (B, L, w.shape[-1])).astype(jnp.float32)
        for k in range(K):
            out = out + jnp.einsum('blc,co->blo', hp[:, k:k + L, :], w[k])
        return out

    def gn(h, gamma, beta):
        hg = h.reshape(B, L, G, cpg)
        mean = hg.mean(axis=(1, 3), keepdims=True)
        var = ((hg - mean) ** 2).mean(axis=(1, 3), keepdims=True)
        hn = (hg - mean) / jnp.sqrt(var + 1e-5)
        return hn.reshape(B, L, C) * gamma + beta

    silu = lambda v: v * jax.nn.sigmoid(v)

    res = x
    h = jnp.concatenate([x, time_cond], axis=-1)
    h = silu(gn(conv1d(h, params["w1"], params["b1"]), params["g1g"], params["g1b"]))
    th = silu(t_in @ params["tw1"] + params["tb1"])
    tm = th @ params["tw2m"] + params["tb2m"]
    ta = th @ params["tw2a"] + params["tb2a"]
    h = h * tm[:, None, :] + ta[:, None, :]
    zh = silu(zsem @ params["cw1"] + params["cb1"])
    zm = zh @ params["cw2m"] + params["cb2m"]
    za = zh @ params["cw2a"] + params["cb2a"]
    h = h * zm[:, None, :] + za[:, None, :]
    h = silu(h)
    h = silu(gn(conv1d(h, params["w2"], params["b2"]), params["g2g"], params["g2b"]))
    return h + res


if __name__ == "__main__":
    # Shapes implied by the module: x (B, in_c, L) [kept channels-last (B,L,C)],
    # time (B, time_channels), zsem (B, cond_channels), time_cond (B, tcc, L).
    B, L, C = 2, 16, 32
    TCC, Tch, Cch = 8, 16, 12
    K, H = 3, 128
    G = min(16, C)

    key = jax.random.PRNGKey(0)
    keys = jax.random.split(key, 24)

    def nrm(k, shape, scale=0.1):
        return (scale * jax.random.normal(k, shape)).astype(jnp.float32)

    x = nrm(keys[0], (B, L, C), 1.0)
    time_cond = nrm(keys[1], (B, L, TCC), 1.0)
    t_in = nrm(keys[2], (B, Tch), 1.0)
    zsem = nrm(keys[3], (B, Cch), 1.0)

    # Deterministic synthetic parameters (PyTorch conv W[o,i,k] stored as w[k,i,o]).
    params = dict(
        w1=nrm(keys[4], (K, C + TCC, C)),
        b1=nrm(keys[5], (1, C)),
        g1g=1.0 + nrm(keys[6], (1, C)),
        g1b=nrm(keys[7], (1, C)),
        w2=nrm(keys[8], (K, C, C)),
        b2=nrm(keys[9], (1, C)),
        g2g=1.0 + nrm(keys[10], (1, C)),
        g2b=nrm(keys[11], (1, C)),
        tw1=nrm(keys[12], (Tch, H)),
        tb1=nrm(keys[13], (1, H)),
        tw2m=nrm(keys[14], (H, C)),
        tb2m=1.0 + nrm(keys[15], (1, C)),
        tw2a=nrm(keys[16], (H, C)),
        tb2a=nrm(keys[17], (1, C)),
        cw1=nrm(keys[18], (Cch, H)),
        cb1=nrm(keys[19], (1, H)),
        cw2m=nrm(keys[20], (H, C)),
        cb2m=1.0 + nrm(keys[21], (1, C)),
        cw2a=nrm(keys[22], (H, C)),
        cb2a=nrm(keys[23], (1, C)),
    )

    ref = jax.block_until_ready(ref_forward(x, time_cond, t_in, zsem, params, K, G))

    # Exact-path validation (f32 conv operands): must match the reference tightly.
    out_f32 = jax.block_until_ready(
        middle_block_1d(x, time_cond, t_in, zsem, params, K=K, G=G,
                        conv_dtype=jnp.float32))
    assert out_f32.shape == (B, L, C) and out_f32.dtype == jnp.float32
    assert jnp.allclose(out_f32, ref, rtol=1e-4, atol=1e-4), \
        f"f32 max abs diff {float(jnp.max(jnp.abs(out_f32 - ref)))}"

    # Fast path (bf16 conv operands on the MXU, f32 accumulation): looser tolerance
    # is expected and intentional (review item: native-bf16 MXU + halved VMEM/DMA).
    out_bf16 = jax.block_until_ready(
        middle_block_1d(x, time_cond, t_in, zsem, params, K=K, G=G))
    assert out_bf16.shape == (B, L, C) and out_bf16.dtype == jnp.float32
    assert jnp.allclose(out_bf16, ref, rtol=5e-2, atol=5e-2), \
        f"bf16 max abs diff {float(jnp.max(jnp.abs(out_bf16 - ref)))}"

    print("KERNEL_OK")
</pallas_src>

<mosaic_0001>
module attributes {stable_mosaic.version = 11 : i64} {
  func.func @middle_block_kernel(%arg0: i32, %arg1: memref<2x16x40xf32, #tpu.memory_space<vmem>>, %arg2: memref<2x2x32xf32, #tpu.memory_space<vmem>>, %arg3: memref<3x40x32xf32, #tpu.memory_space<vmem>>, %arg4: memref<3x32x32xf32, #tpu.memory_space<vmem>>, %arg5: memref<6x32xf32, #tpu.memory_space<vmem>>, %arg6: memref<32x16xf32, #tpu.memory_space<vmem>>, %arg7: memref<16x32xf32, #tpu.memory_space<vmem>>, %arg8: memref<2x512xf32, #tpu.memory_space<vmem>>) attributes {dimension_semantics = [#tpu.dimension_semantics<parallel>], iteration_bounds = array<i64: 1>, scalar_prefetch = 0 : i64, scratch_operands = 0 : i64, tpu.core_type = #tpu.core_type<tc>, window_params = [{transform_indices = @transform_0, window_bounds = array<i64: 2, 16, 40>}, {transform_indices = @transform_1, window_bounds = array<i64: 2, 2, 32>}, {pipeline_mode = #tpu.pipeline_mode<synchronous>, transform_indices = @transform_2, window_bounds = array<i64: 3, 40, 32>}, {pipeline_mode = #tpu.pipeline_mode<synchronous>, transform_indices = @transform_3, window_bounds = array<i64: 3, 32, 32>}, {pipeline_mode = #tpu.pipeline_mode<synchronous>, transform_indices = @transform_4, window_bounds = array<i64: 6, 32>}, {pipeline_mode = #tpu.pipeline_mode<synchronous>, transform_indices = @transform_5, window_bounds = array<i64: 32, 16>}, {pipeline_mode = #tpu.pipeline_mode<synchronous>, transform_indices = @transform_6, window_bounds = array<i64: 16, 32>}, {transform_indices = @transform_7, window_bounds = array<i64: 2, 512>}]} {
    %c0 = arith.constant 0 : index
    %c0_0 = arith.constant 0 : index
    %c0_1 = arith.constant 0 : index
    %0 = vector.load %arg1[%c0, %c0_0, %c0_1] : memref<2x16x40xf32, #tpu.memory_space<vmem>>, vector<2x16x40xf32>
    %c0_2 = arith.constant 0 : index
    %c0_3 = arith.constant 0 : index
    %c0_4 = arith.constant 0 : index
    %1 = vector.load %arg2[%c0_2, %c0_3, %c0_4] : memref<2x2x32xf32, #tpu.memory_space<vmem>>, vector<2x2x32xf32>
    %c0_5 = arith.constant 0 : index
    %c0_6 = arith.constant 0 : index
    %2 = vector.load %arg6[%c0_5, %c0_6] : memref<32x16xf32, #tpu.memory_space<vmem>>, vector<32x16xf32>
    %c0_7 = arith.constant 0 : index
    %c0_8 = arith.constant 0 : index
    %3 = vector.load %arg7[%c0_7, %c0_8] : memref<16x32xf32, #tpu.memory_space<vmem>>, vector<16x32xf32>
    %c0_9 = arith.constant 0 : index
    %c0_10 = arith.constant 0 : index
    %4 = vector.load %arg5[%c0_9, %c0_10] : memref<6x32xf32, #tpu.memory_space<vmem>>, vector<6x32xf32>
    %c0_11 = arith.constant 0 : index
    %c0_12 = arith.constant 0 : index
    %c0_13 = arith.constant 0 : index
    %5 = vector.load %arg3[%c0_11, %c0_12, %c0_13] : memref<3x40x32xf32, #tpu.memory_space<vmem>>, vector<3x40x32xf32>
    %c0_14 = arith.constant 0 : index
    %c0_15 = arith.constant 0 : index
    %c0_16 = arith.constant 0 : index
    %6 = vector.load %arg4[%c0_14, %c0_15, %c0_16] : memref<3x32x32xf32, #tpu.memory_space<vmem>>, vector<3x32x32xf32>
    %7 = vector.extract_strided_slice %4 {offsets = [0, 0], sizes = [1, 32], strides = [1, 1]} : vector<6x32xf32> to vector<1x32xf32>
    %8 = vector.extract_strided_slice %4 {offsets = [1, 0], sizes = [1, 32], strides = [1, 1]} : vector<6x32xf32> to vector<1x32xf32>
    %9 = vector.extract_strided_slice %4 {offsets = [2, 0], sizes = [1, 32], strides = [1, 1]} : vector<6x32xf32> to vector<1x32xf32>
    %10 = vector.extract_strided_slice %4 {offsets = [3, 0], sizes = [1, 32], strides = [1, 1]} : vector<6x32xf32> to vector<1x32xf32>
    %11 = vector.extract_strided_slice %4 {offsets = [4, 0], sizes = [1, 32], strides = [1, 1]} : vector<6x32xf32> to vector<1x32xf32>
    %12 = vector.extract_strided_slice %4 {offsets = [5, 0], sizes = [1, 32], strides = [1, 1]} : vector<6x32xf32> to vector<1x32xf32>
    %cst = arith.constant 0.000000e+00 : f32
    %13 = vector.broadcast %cst : f32 to vector<2x1x40xf32>
    %14 = tpu.concatenate %13, %0, %13 in 1 : vector<2x1x40xf32>, vector<2x16x40xf32>, vector<2x1x40xf32> -> vector<2x18x40xf32>
    %cst_17 = arith.constant 0.000000e+00 : f32
    %15 = vector.broadcast %cst_17 : f32 to vector<32x32xf32>
    %16 = vector.extract_strided_slice %14 {offsets = [0, 0, 0], sizes = [2, 16, 40], strides = [1, 1, 1]} : vector<2x18x40xf32> to vector<2x16x40xf32>
    %17 = vector.shape_cast %16 : vector<2x16x40xf32> to vector<32x40xf32>
    %18 = vector.extract_strided_slice %5 {offsets = [0, 0, 0], sizes = [1, 40, 32], strides = [1, 1, 1]} : vector<3x40x32xf32> to vector<1x40x32xf32>
    %19 = vector.shape_cast %18 : vector<1x40x32xf32> to vector<40x32xf32>
    %cst_18 = arith.constant dense<0.000000e+00> : vector<32x32xf32>
    %20 = tpu.matmul %17, %19, %cst_18 {dimension_numbers = #tpu.dot_dimension_numbers<[1], [0], [0], [1], [0, 0, 1, 1], [], []>} : vector<32x40xf32>, vector<40x32xf32>, vector<32x32xf32> -> vector<32x32xf32>
    %21 = arith.addf %15, %20 : vector<32x32xf32>
    %22 = vector.extract_strided_slice %14 {offsets = [0, 1, 0], sizes = [2, 16, 40], strides = [1, 1, 1]} : vector<2x18x40xf32> to vector<2x16x40xf32>
    %23 = vector.shape_cast %22 : vector<2x16x40xf32> to vector<32x40xf32>
    %24 = vector.extract_strided_slice %5 {offsets = [1, 0, 0], sizes = [1, 40, 32], strides = [1, 1, 1]} : vector<3x40x32xf32> to vector<1x40x32xf32>
    %25 = vector.shape_cast %24 : vector<1x40x32xf32> to vector<40x32xf32>
    %cst_19 = arith.constant dense<0.000000e+00> : vector<32x32xf32>
    %26 = tpu.matmul %23, %25, %cst_19 {dimension_numbers = #tpu.dot_dimension_numbers<[1], [0], [0], [1], [0, 0, 1, 1], [], []>} : vector<32x40xf32>, vector<40x32xf32>, vector<32x32xf32> -> vector<32x32xf32>
    %27 = arith.addf %21, %26 : vector<32x32xf32>
    %28 = vector.extract_strided_slice %14 {offsets = [0, 2, 0], sizes = [2, 16, 40], strides = [1, 1, 1]} : vector<2x18x40xf32> to vector<2x16x40xf32>
    %29 = vector.shape_cast %28 : vector<2x16x40xf32> to vector<32x40xf32>
    %30 = vector.extract_strided_slice %5 {offsets = [2, 0, 0], sizes = [1, 40, 32], strides = [1, 1, 1]} : vector<3x40x32xf32> to vector<1x40x32xf32>
    %31 = vector.shape_cast %30 : vector<1x40x32xf32> to vector<40x32xf32>
    %cst_20 = arith.constant dense<0.000000e+00> : vector<32x32xf32>
    %32 = tpu.matmul %29, %31, %cst_20 {dimension_numbers = #tpu.dot_dimension_numbers<[1], [0], [0], [1], [0, 0, 1, 1], [], []>} : vector<32x40xf32>, vector<40x32xf32>, vector<32x32xf32> -> vector<32x32xf32>
    %33 = arith.addf %27, %32 : vector<32x32xf32>
    %34 = vector.broadcast %7 : vector<1x32xf32> to vector<32x32xf32>
    %35 = arith.addf %33, %34 : vector<32x32xf32>
    %36 = vector.shape_cast %35 : vector<32x32xf32> to vector<2x16x32xf32>
    %cst_21 = arith.constant dense<0.000000e+00> : vector<2x32xf32>
    %37 = vector.multi_reduction <add>, %36, %cst_21 [1] : vector<2x16x32xf32> to vector<2x32xf32>
    %cst_22 = arith.constant dense<0.000000e+00> : vector<2x16xf32>
    %38 = tpu.matmul %37, %2, %cst_22 {dimension_numbers = #tpu.dot_dimension_numbers<[1], [0], [0], [1], [0, 0, 1, 1], [], []>} : vector<2x32xf32>, vector<32x16xf32>, vector<2x16xf32> -> vector<2x16xf32>
    %cst_23 = arith.constant 3.200000e+01 : f32
    %39 = vector.broadcast %cst_23 : f32 to vector<2x16xf32>
    %40 = arith.divf %38, %39 : vector<2x16xf32>
    %cst_24 = arith.constant dense<0.000000e+00> : vector<2x32xf32>
    %41 = tpu.matmul %40, %3, %cst_24 {dimension_numbers = #tpu.dot_dimension_numbers<[1], [0], [0], [1], [0, 0, 1, 1], [], []>} : vector<2x16xf32>, vector<16x32xf32>, vector<2x32xf32> -> vector<2x32xf32>
    %42 = vector.shape_cast %41 : vector<2x32xf32> to vector<2x1x32xf32>
    %43 = vector.broadcast %42 : vector<2x1x32xf32> to vector<2x16x32xf32>
    %44 = arith.subf %36, %43 : vector<2x16x32xf32>
    %45 = arith.mulf %44, %44 : vector<2x16x32xf32>
    %cst_25 = arith.constant dense<0.000000e+00> : vector<2x32xf32>
    %46 = vector.multi_reduction <add>, %45, %cst_25 [1] : vector<2x16x32xf32> to vector<2x32xf32>
    %cst_26 = arith.constant dense<0.000000e+00> : vector<2x16xf32>
    %47 = tpu.matmul %46, %2, %cst_26 {dimension_numbers = #tpu.dot_dimension_numbers<[1], [0], [0], [1], [0, 0, 1, 1], [], []>} : vector<2x32xf32>, vector<32x16xf32>, vector<2x16xf32> -> vector<2x16xf32>
    %cst_27 = arith.constant 3.200000e+01 : f32
    %48 = vector.broadcast %cst_27 : f32 to vector<2x16xf32>
    %49 = arith.divf %47, %48 : vector<2x16xf32>
    %cst_28 = arith.constant dense<0.000000e+00> : vector<2x32xf32>
    %50 = tpu.matmul %49, %3, %cst_28 {dimension_numbers = #tpu.dot_dimension_numbers<[1], [0], [0], [1], [0, 0, 1, 1], [], []>} : vector<2x16xf32>, vector<16x32xf32>, vector<2x32xf32> -> vector<2x32xf32>
    %51 = vector.shape_cast %50 : vector<2x32xf32> to vector<2x1x32xf32>
    %cst_29 = arith.constant 9.99999974E-6 : f32
    %52 = vector.broadcast %cst_29 : f32 to vector<2x1x32xf32>
    %53 = arith.addf %51, %52 : vector<2x1x32xf32>
    %54 = math.rsqrt %53 : vector<2x1x32xf32>
    %55 = vector.shape_cast %8 : vector<1x32xf32> to vector<1x1x32xf32>
    %56 = vector.broadcast %55 : vector<1x1x32xf32> to vector<2x1x32xf32>
    %57 = arith.mulf %56, %54 : vector<2x1x32xf32>
    %58 = vector.broadcast %57 : vector<2x1x32xf32> to vector<2x16x32xf32>
    %59 = arith.mulf %44, %58 : vector<2x16x32xf32>
    %60 = vector.shape_cast %9 : vector<1x32xf32> to vector<1x1x32xf32>
    %61 = vector.broadcast %60 : vector<1x1x32xf32> to vector<2x16x32xf32>
    %62 = arith.addf %59, %61 : vector<2x16x32xf32>
    %cst_30 = arith.constant 5.000000e-01 : f32
    %63 = vector.broadcast %cst_30 : f32 to vector<2x16x32xf32>
    %64 = arith.mulf %63, %62 : vector<2x16x32xf32>
    %65 = math.tanh %64 : vector<2x16x32xf32>
    %cst_31 = arith.constant 5.000000e-01 : f32
    %66 = vector.broadcast %cst_31 : f32 to vector<2x16x32xf32>
    %67 = arith.mulf %66, %65 : vector<2x16x32xf32>
    %cst_32 = arith.constant 5.000000e-01 : f32
    %68 = vector.broadcast %cst_32 : f32 to vector<2x16x32xf32>
    %69 = arith.addf %67, %68 : vector<2x16x32xf32>
    %70 = arith.mulf %62, %69 : vector<2x16x32xf32>
    %71 = vector.extract_strided_slice %1 {offsets = [0, 0, 0], sizes = [2, 1, 32], strides = [1, 1, 1]} : vector<2x2x32xf32> to vector<2x1x32xf32>
    %72 = vector.broadcast %71 : vector<2x1x32xf32> to vector<2x16x32xf32>
    %73 = arith.mulf %70, %72 : vector<2x16x32xf32>
    %74 = vector.extract_strided_slice %1 {offsets = [0, 1, 0], sizes = [2, 1, 32], strides = [1, 1, 1]} : vector<2x2x32xf32> to vector<2x1x32xf32>
    %75 = vector.broadcast %74 : vector<2x1x32xf32> to vector<2x16x32xf32>
    %76 = arith.addf %73, %75 : vector<2x16x32xf32>
    %cst_33 = arith.constant 5.000000e-01 : f32
    %77 = vector.broadcast %cst_33 : f32 to vector<2x16x32xf32>
    %78 = arith.mulf %77, %76 : vector<2x16x32xf32>
    %79 = math.tanh %78 : vector<2x16x32xf32>
    %cst_34 = arith.constant 5.000000e-01 : f32
    %80 = vector.broadcast %cst_34 : f32 to vector<2x16x32xf32>
    %81 = arith.mulf %80, %79 : vector<2x16x32xf32>
    %cst_35 = arith.constant 5.000000e-01 : f32
    %82 = vector.broadcast %cst_35 : f32 to vector<2x16x32xf32>
    %83 = arith.addf %81, %82 : vector<2x16x32xf32>
    %84 = arith.mulf %76, %83 : vector<2x16x32xf32>
    %cst_36 = arith.constant 0.000000e+00 : f32
    %85 = vector.broadcast %cst_36 : f32 to vector<2x1x32xf32>
    %86 = tpu.concatenate %85, %84, %85 in 1 : vector<2x1x32xf32>, vector<2x16x32xf32>, vector<2x1x32xf32> -> vector<2x18x32xf32>
    %cst_37 = arith.constant 0.000000e+00 : f32
    %87 = vector.broadcast %cst_37 : f32 to vector<32x32xf32>
    %88 = vector.extract_strided_slice %86 {offsets = [0, 0, 0], sizes = [2, 16, 32], strides = [1, 1, 1]} : vector<2x18x32xf32> to vector<2x16x32xf32>
    %89 = vector.shape_cast %88 : vector<2x16x32xf32> to vector<32x32xf32>
    %90 = vector.extract_strided_slice %6 {offsets = [0, 0, 0], sizes = [1, 32, 32], strides = [1, 1, 1]} : vector<3x32x32xf32> to vector<1x32x32xf32>
    %91 = vector.shape_cast %90 : vector<1x32x32xf32> to vector<32x32xf32>
    %cst_38 = arith.constant dense<0.000000e+00> : vector<32x32xf32>
    %92 = tpu.matmul %89, %91, %cst_38 {dimension_numbers = #tpu.dot_dimension_numbers<[1], [0], [0], [1], [0, 0, 1, 1], [], []>} : vector<32x32xf32>, vector<32x32xf32>, vector<32x32xf32> -> vector<32x32xf32>
    %93 = arith.addf %87, %92 : vector<32x32xf32>
    %94 = vector.extract_strided_slice %86 {offsets = [0, 1, 0], sizes = [2, 16, 32], strides = [1, 1, 1]} : vector<2x18x32xf32> to vector<2x16x32xf32>
    %95 = vector.shape_cast %94 : vector<2x16x32xf32> to vector<32x32xf32>
    %96 = vector.extract_strided_slice %6 {offsets = [1, 0, 0], sizes = [1, 32, 32], strides = [1, 1, 1]} : vector<3x32x32xf32> to vector<1x32x32xf32>
    %97 = vector.shape_cast %96 : vector<1x32x32xf32> to vector<32x32xf32>
    %cst_39 = arith.constant dense<0.000000e+00> : vector<32x32xf32>
    %98 = tpu.matmul %95, %97, %cst_39 {dimension_numbers = #tpu.dot_dimension_numbers<[1], [0], [0], [1], [0, 0, 1, 1], [], []>} : vector<32x32xf32>, vector<32x32xf32>, vector<32x32xf32> -> vector<32x32xf32>
    %99 = arith.addf %93, %98 : vector<32x32xf32>
    %100 = vector.extract_strided_slice %86 {offsets = [0, 2, 0], sizes = [2, 16, 32], strides = [1, 1, 1]} : vector<2x18x32xf32> to vector<2x16x32xf32>
    %101 = vector.shape_cast %100 : vector<2x16x32xf32> to vector<32x32xf32>
    %102 = vector.extract_strided_slice %6 {offsets = [2, 0, 0], sizes = [1, 32, 32], strides = [1, 1, 1]} : vector<3x32x32xf32> to vector<1x32x32xf32>
    %103 = vector.shape_cast %102 : vector<1x32x32xf32> to vector<32x32xf32>
    %cst_40 = arith.constant dense<0.000000e+00> : vector<32x32xf32>
    %104 = tpu.matmul %101, %103, %cst_40 {dimension_numbers = #tpu.dot_dimension_numbers<[1], [0], [0], [1], [0, 0, 1, 1], [], []>} : vector<32x32xf32>, vector<32x32xf32>, vector<32x32xf32> -> vector<32x32xf32>
    %105 = arith.addf %99, %104 : vector<32x32xf32>
    %106 = vector.broadcast %10 : vector<1x32xf32> to vector<32x32xf32>
    %107 = arith.addf %105, %106 : vector<32x32xf32>
    %108 = vector.shape_cast %107 : vector<32x32xf32> to vector<2x16x32xf32>
    %cst_41 = arith.constant dense<0.000000e+00> : vector<2x32xf32>
    %109 = vector.multi_reduction <add>, %108, %cst_41 [1] : vector<2x16x32xf32> to vector<2x32xf32>
    %cst_42 = arith.constant dense<0.000000e+00> : vector<2x16xf32>
    %110 = tpu.matmul %109, %2, %cst_42 {dimension_numbers = #tpu.dot_dimension_numbers<[1], [0], [0], [1], [0, 0, 1, 1], [], []>} : vector<2x32xf32>, vector<32x16xf32>, vector<2x16xf32> -> vector<2x16xf32>
    %cst_43 = arith.constant 3.200000e+01 : f32
    %111 = vector.broadcast %cst_43 : f32 to vector<2x16xf32>
    %112 = arith.divf %110, %111 : vector<2x16xf32>
    %cst_44 = arith.constant dense<0.000000e+00> : vector<2x32xf32>
    %113 = tpu.matmul %112, %3, %cst_44 {dimension_numbers = #tpu.dot_dimension_numbers<[1], [0], [0], [1], [0, 0, 1, 1], [], []>} : vector<2x16xf32>, vector<16x32xf32>, vector<2x32xf32> -> vector<2x32xf32>
    %114 = vector.shape_cast %113 : vector<2x32xf32> to vector<2x1x32xf32>
    %115 = vector.broadcast %114 : vector<2x1x32xf32> to vector<2x16x32xf32>
    %116 = arith.subf %108, %115 : vector<2x16x32xf32>
    %117 = arith.mulf %116, %116 : vector<2x16x32xf32>
    %cst_45 = arith.constant dense<0.000000e+00> : vector<2x32xf32>
    %118 = vector.multi_reduction <add>, %117, %cst_45 [1] : vector<2x16x32xf32> to vector<2x32xf32>
    %cst_46 = arith.constant dense<0.000000e+00> : vector<2x16xf32>
    %119 = tpu.matmul %118, %2, %cst_46 {dimension_numbers = #tpu.dot_dimension_numbers<[1], [0], [0], [1], [0, 0, 1, 1], [], []>} : vector<2x32xf32>, vector<32x16xf32>, vector<2x16xf32> -> vector<2x16xf32>
    %cst_47 = arith.constant 3.200000e+01 : f32
    %120 = vector.broadcast %cst_47 : f32 to vector<2x16xf32>
    %121 = arith.divf %119, %120 : vector<2x16xf32>
    %cst_48 = arith.constant dense<0.000000e+00> : vector<2x32xf32>
    %122 = tpu.matmul %121, %3, %cst_48 {dimension_numbers = #tpu.dot_dimension_numbers<[1], [0], [0], [1], [0, 0, 1, 1], [], []>} : vector<2x16xf32>, vector<16x32xf32>, vector<2x32xf32> -> vector<2x32xf32>
    %123 = vector.shape_cast %122 : vector<2x32xf32> to vector<2x1x32xf32>
    %cst_49 = arith.constant 9.99999974E-6 : f32
    %124 = vector.broadcast %cst_49 : f32 to vector<2x1x32xf32>
    %125 = arith.addf %123, %124 : vector<2x1x32xf32>
    %126 = math.rsqrt %125 : vector<2x1x32xf32>
    %127 = vector.shape_cast %11 : vector<1x32xf32> to vector<1x1x32xf32>
    %128 = vector.broadcast %127 : vector<1x1x32xf32> to vector<2x1x32xf32>
    %129 = arith.mulf %128, %126 : vector<2x1x32xf32>
    %130 = vector.broadcast %129 : vector<2x1x32xf32> to vector<2x16x32xf32>
    %131 = arith.mulf %116, %130 : vector<2x16x32xf32>
    %132 = vector.shape_cast %12 : vector<1x32xf32> to vector<1x1x32xf32>
    %133 = vector.broadcast %132 : vector<1x1x32xf32> to vector<2x16x32xf32>
    %134 = arith.addf %131, %133 : vector<2x16x32xf32>
    %cst_50 = arith.constant 5.000000e-01 : f32
    %135 = vector.broadcast %cst_50 : f32 to vector<2x16x32xf32>
    %136 = arith.mulf %135, %134 : vector<2x16x32xf32>
    %137 = math.tanh %136 : vector<2x16x32xf32>
    %cst_51 = arith.constant 5.000000e-01 : f32
    %138 = vector.broadcast %cst_51 : f32 to vector<2x16x32xf32>
    %139 = arith.mulf %138, %137 : vector<2x16x32xf32>
    %cst_52 = arith.constant 5.000000e-01 : f32
    %140 = vector.broadcast %cst_52 : f32 to vector<2x16x32xf32>
    %141 = arith.addf %139, %140 : vector<2x16x32xf32>
    %142 = arith.mulf %134, %141 : vector<2x16x32xf32>
    %143 = vector.extract_strided_slice %0 {offsets = [0, 0, 0], sizes = [2, 16, 32], strides = [1, 1, 1]} : vector<2x16x40xf32> to vector<2x16x32xf32>
    %144 = arith.addf %142, %143 : vector<2x16x32xf32>
    %145 = vector.shape_cast %144 : vector<2x16x32xf32> to vector<2x512xf32>
    %c0_53 = arith.constant 0 : index
    %c0_54 = arith.constant 0 : index
    %146 = vector.load %arg8[%c0_53, %c0_54] : memref<2x512xf32, #tpu.memory_space<vmem>>, vector<2x512xf32>
    tpu.vector_store %arg8[%c0_53, %c0_54], %145 {strides = array<i32>} : memref<2x512xf32, #tpu.memory_space<vmem>>, vector<2x512xf32>,
    return
  }
  func.func @transform_0(%arg0: i32) -> (i32, i32, i32) {
    %c0_i32 = arith.constant 0 : i32
    %c0_i32_0 = arith.constant 0 : i32
    %c0_i32_1 = arith.constant 0 : i32
    return %arg0, %c0_i32, %c0_i32_0 : i32, i32, i32
  }
  func.func @transform_1(%arg0: i32) -> (i32, i32, i32) {
    %c0_i32 = arith.constant 0 : i32
    %c0_i32_0 = arith.constant 0 : i32
    %c0_i32_1 = arith.constant 0 : i32
    return %arg0, %c0_i32, %c0_i32_0 : i32, i32, i32
  }
  func.func @transform_2(%arg0: i32) -> (i32, i32, i32) {
    %c0_i32 = arith.constant 0 : i32
    %c0_i32_0 = arith.constant 0 : i32
    %c0_i32_1 = arith.constant 0 : i32
    %c0_i32_2 = arith.constant 0 : i32
    return %c0_i32, %c0_i32_0, %c0_i32_1 : i32, i32, i32
  }
  func.func @transform_3(%arg0: i32) -> (i32, i32, i32) {
    %c0_i32 = arith.constant 0 : i32
    %c0_i32_0 = arith.constant 0 : i32
    %c0_i32_1 = arith.constant 0 : i32
    %c0_i32_2 = arith.constant 0 : i32
    return %c0_i32, %c0_i32_0, %c0_i32_1 : i32, i32, i32
  }
  func.func @transform_4(%arg0: i32) -> (i32, i32) {
    %c0_i32 = arith.constant 0 : i32
    %c0_i32_0 = arith.constant 0 : i32
    %c0_i32_1 = arith.constant 0 : i32
    return %c0_i32, %c0_i32_0 : i32, i32
  }
  func.func @transform_5(%arg0: i32) -> (i32, i32) {
    %c0_i32 = arith.constant 0 : i32
    %c0_i32_0 = arith.constant 0 : i32
    %c0_i32_1 = arith.constant 0 : i32
    return %c0_i32, %c0_i32_0 : i32, i32
  }
  func.func @transform_6(%arg0: i32) -> (i32, i32) {
    %c0_i32 = arith.constant 0 : i32
    %c0_i32_0 = arith.constant 0 : i32
    %c0_i32_1 = arith.constant 0 : i32
    return %c0_i32, %c0_i32_0 : i32, i32
  }
  func.func @transform_7(%arg0: i32) -> (i32, i32) {
    %c0_i32 = arith.constant 0 : i32
    %c0_i32_0 = arith.constant 0 : i32
    return %arg0, %c0_i32 : i32, i32
  }
}

module attributes {stable_mosaic.version = 11 : i64} {
  func.func @middle_block_kernel(%arg0: i32, %arg1: memref<2x16x40xf32, #tpu.memory_space<vmem>>, %arg2: memref<2x2x32xf32, #tpu.memory_space<vmem>>, %arg3: memref<3x40x32xf32, #tpu.memory_space<vmem>>, %arg4: memref<3x32x32xf32, #tpu.memory_space<vmem>>, %arg5: memref<6x32xf32, #tpu.memory_space<vmem>>, %arg6: memref<32x16xf32, #tpu.memory_space<vmem>>, %arg7: memref<16x32xf32, #tpu.memory_space<vmem>>, %arg8: memref<2x16x32xf32, #tpu.memory_space<vmem>>) attributes {dimension_semantics = [#tpu.dimension_semantics<parallel>], iteration_bounds = array<i64: 1>, scalar_prefetch = 0 : i64, scratch_operands = 0 : i64, tpu.core_type = #tpu.core_type<tc>, window_params = [{transform_indices = @transform_0, window_bounds = array<i64: 2, 16, 40>}, {transform_indices = @transform_1, window_bounds = array<i64: 2, 2, 32>}, {pipeline_mode = #tpu.pipeline_mode<synchronous>, transform_indices = @transform_2, window_bounds = array<i64: 3, 40, 32>}, {pipeline_mode = #tpu.pipeline_mode<synchronous>, transform_indices = @transform_3, window_bounds = array<i64: 3, 32, 32>}, {pipeline_mode = #tpu.pipeline_mode<synchronous>, transform_indices = @transform_4, window_bounds = array<i64: 6, 32>}, {pipeline_mode = #tpu.pipeline_mode<synchronous>, transform_indices = @transform_5, window_bounds = array<i64: 32, 16>}, {pipeline_mode = #tpu.pipeline_mode<synchronous>, transform_indices = @transform_6, window_bounds = array<i64: 16, 32>}, {transform_indices = @transform_7, window_bounds = array<i64: 2, 16, 32>}]} {
    %c0 = arith.constant 0 : index
    %c0_0 = arith.constant 0 : index
    %c0_1 = arith.constant 0 : index
    %0 = vector.load %arg1[%c0, %c0_0, %c0_1] : memref<2x16x40xf32, #tpu.memory_space<vmem>>, vector<2x16x40xf32>
    %c0_2 = arith.constant 0 : index
    %c0_3 = arith.constant 0 : index
    %c0_4 = arith.constant 0 : index
    %1 = vector.load %arg2[%c0_2, %c0_3, %c0_4] : memref<2x2x32xf32, #tpu.memory_space<vmem>>, vector<2x2x32xf32>
    %c0_5 = arith.constant 0 : index
    %c0_6 = arith.constant 0 : index
    %2 = vector.load %arg6[%c0_5, %c0_6] : memref<32x16xf32, #tpu.memory_space<vmem>>, vector<32x16xf32>
    %c0_7 = arith.constant 0 : index
    %c0_8 = arith.constant 0 : index
    %3 = vector.load %arg7[%c0_7, %c0_8] : memref<16x32xf32, #tpu.memory_space<vmem>>, vector<16x32xf32>
    %c0_9 = arith.constant 0 : index
    %c0_10 = arith.constant 0 : index
    %4 = vector.load %arg5[%c0_9, %c0_10] : memref<6x32xf32, #tpu.memory_space<vmem>>, vector<6x32xf32>
    %c0_11 = arith.constant 0 : index
    %c0_12 = arith.constant 0 : index
    %c0_13 = arith.constant 0 : index
    %5 = vector.load %arg3[%c0_11, %c0_12, %c0_13] : memref<3x40x32xf32, #tpu.memory_space<vmem>>, vector<3x40x32xf32>
    %c0_14 = arith.constant 0 : index
    %c0_15 = arith.constant 0 : index
    %c0_16 = arith.constant 0 : index
    %6 = vector.load %arg4[%c0_14, %c0_15, %c0_16] : memref<3x32x32xf32, #tpu.memory_space<vmem>>, vector<3x32x32xf32>
    %7 = vector.extract_strided_slice %4 {offsets = [0, 0], sizes = [1, 32], strides = [1, 1]} : vector<6x32xf32> to vector<1x32xf32>
    %8 = vector.extract_strided_slice %4 {offsets = [1, 0], sizes = [1, 32], strides = [1, 1]} : vector<6x32xf32> to vector<1x32xf32>
    %9 = vector.extract_strided_slice %4 {offsets = [2, 0], sizes = [1, 32], strides = [1, 1]} : vector<6x32xf32> to vector<1x32xf32>
    %10 = vector.extract_strided_slice %4 {offsets = [3, 0], sizes = [1, 32], strides = [1, 1]} : vector<6x32xf32> to vector<1x32xf32>
    %11 = vector.extract_strided_slice %4 {offsets = [4, 0], sizes = [1, 32], strides = [1, 1]} : vector<6x32xf32> to vector<1x32xf32>
    %12 = vector.extract_strided_slice %4 {offsets = [5, 0], sizes = [1, 32], strides = [1, 1]} : vector<6x32xf32> to vector<1x32xf32>
    %cst = arith.constant 0.000000e+00 : f32
    %13 = vector.broadcast %cst : f32 to vector<2x1x40xf32>
    %14 = tpu.concatenate %13, %0, %13 in 1 : vector<2x1x40xf32>, vector<2x16x40xf32>, vector<2x1x40xf32> -> vector<2x18x40xf32>
    %cst_17 = arith.constant 0.000000e+00 : f32
    %15 = vector.broadcast %cst_17 : f32 to vector<32x32xf32>
    %16 = vector.extract_strided_slice %14 {offsets = [0, 0, 0], sizes = [2, 16, 40], strides = [1, 1, 1]} : vector<2x18x40xf32> to vector<2x16x40xf32>
    %17 = vector.shape_cast %16 : vector<2x16x40xf32> to vector<32x40xf32>
    %18 = vector.extract_strided_slice %5 {offsets = [0, 0, 0], sizes = [1, 40, 32], strides = [1, 1, 1]} : vector<3x40x32xf32> to vector<1x40x32xf32>
    %19 = vector.shape_cast %18 : vector<1x40x32xf32> to vector<40x32xf32>
    %cst_18 = arith.constant dense<0.000000e+00> : vector<32x32xf32>
    %20 = tpu.matmul %17, %19, %cst_18 {dimension_numbers = #tpu.dot_dimension_numbers<[1], [0], [0], [1], [0, 0, 1, 1], [], []>} : vector<32x40xf32>, vector<40x32xf32>, vector<32x32xf32> -> vector<32x32xf32>
    %21 = arith.addf %15, %20 : vector<32x32xf32>
    %22 = vector.extract_strided_slice %14 {offsets = [0, 1, 0], sizes = [2, 16, 40], strides = [1, 1, 1]} : vector<2x18x40xf32> to vector<2x16x40xf32>
    %23 = vector.shape_cast %22 : vector<2x16x40xf32> to vector<32x40xf32>
    %24 = vector.extract_strided_slice %5 {offsets = [1, 0, 0], sizes = [1, 40, 32], strides = [1, 1, 1]} : vector<3x40x32xf32> to vector<1x40x32xf32>
    %25 = vector.shape_cast %24 : vector<1x40x32xf32> to vector<40x32xf32>
    %cst_19 = arith.constant dense<0.000000e+00> : vector<32x32xf32>
    %26 = tpu.matmul %23, %25, %cst_19 {dimension_numbers = #tpu.dot_dimension_numbers<[1], [0], [0], [1], [0, 0, 1, 1], [], []>} : vector<32x40xf32>, vector<40x32xf32>, vector<32x32xf32> -> vector<32x32xf32>
    %27 = arith.addf %21, %26 : vector<32x32xf32>
    %28 = vector.extract_strided_slice %14 {offsets = [0, 2, 0], sizes = [2, 16, 40], strides = [1, 1, 1]} : vector<2x18x40xf32> to vector<2x16x40xf32>
    %29 = vector.shape_cast %28 : vector<2x16x40xf32> to vector<32x40xf32>
    %30 = vector.extract_strided_slice %5 {offsets = [2, 0, 0], sizes = [1, 40, 32], strides = [1, 1, 1]} : vector<3x40x32xf32> to vector<1x40x32xf32>
    %31 = vector.shape_cast %30 : vector<1x40x32xf32> to vector<40x32xf32>
    %cst_20 = arith.constant dense<0.000000e+00> : vector<32x32xf32>
    %32 = tpu.matmul %29, %31, %cst_20 {dimension_numbers = #tpu.dot_dimension_numbers<[1], [0], [0], [1], [0, 0, 1, 1], [], []>} : vector<32x40xf32>, vector<40x32xf32>, vector<32x32xf32> -> vector<32x32xf32>
    %33 = arith.addf %27, %32 : vector<32x32xf32>
    %34 = vector.broadcast %7 : vector<1x32xf32> to vector<32x32xf32>
    %35 = arith.addf %33, %34 : vector<32x32xf32>
    %36 = vector.shape_cast %35 : vector<32x32xf32> to vector<2x16x32xf32>
    %cst_21 = arith.constant dense<0.000000e+00> : vector<2x32xf32>
    %37 = vector.multi_reduction <add>, %36, %cst_21 [1] : vector<2x16x32xf32> to vector<2x32xf32>
    %cst_22 = arith.constant dense<0.000000e+00> : vector<2x16xf32>
    %38 = tpu.matmul %37, %2, %cst_22 {dimension_numbers = #tpu.dot_dimension_numbers<[1], [0], [0], [1], [0, 0, 1, 1], [], []>} : vector<2x32xf32>, vector<32x16xf32>, vector<2x16xf32> -> vector<2x16xf32>
    %cst_23 = arith.constant 3.200000e+01 : f32
    %39 = vector.broadcast %cst_23 : f32 to vector<2x16xf32>
    %40 = arith.divf %38, %39 : vector<2x16xf32>
    %cst_24 = arith.constant dense<0.000000e+00> : vector<2x32xf32>
    %41 = tpu.matmul %40, %3, %cst_24 {dimension_numbers = #tpu.dot_dimension_numbers<[1], [0], [0], [1], [0, 0, 1, 1], [], []>} : vector<2x16xf32>, vector<16x32xf32>, vector<2x32xf32> -> vector<2x32xf32>
    %42 = vector.shape_cast %41 : vector<2x32xf32> to vector<2x1x32xf32>
    %43 = vector.broadcast %42 : vector<2x1x32xf32> to vector<2x16x32xf32>
    %44 = arith.subf %36, %43 : vector<2x16x32xf32>
    %45 = arith.mulf %44, %44 : vector<2x16x32xf32>
    %cst_25 = arith.constant dense<0.000000e+00> : vector<2x32xf32>
    %46 = vector.multi_reduction <add>, %45, %cst_25 [1] : vector<2x16x32xf32> to vector<2x32xf32>
    %cst_26 = arith.constant dense<0.000000e+00> : vector<2x16xf32>
    %47 = tpu.matmul %46, %2, %cst_26 {dimension_numbers = #tpu.dot_dimension_numbers<[1], [0], [0], [1], [0, 0, 1, 1], [], []>} : vector<2x32xf32>, vector<32x16xf32>, vector<2x16xf32> -> vector<2x16xf32>
    %cst_27 = arith.constant 3.200000e+01 : f32
    %48 = vector.broadcast %cst_27 : f32 to vector<2x16xf32>
    %49 = arith.divf %47, %48 : vector<2x16xf32>
    %cst_28 = arith.constant dense<0.000000e+00> : vector<2x32xf32>
    %50 = tpu.matmul %49, %3, %cst_28 {dimension_numbers = #tpu.dot_dimension_numbers<[1], [0], [0], [1], [0, 0, 1, 1], [], []>} : vector<2x16xf32>, vector<16x32xf32>, vector<2x32xf32> -> vector<2x32xf32>
    %51 = vector.shape_cast %50 : vector<2x32xf32> to vector<2x1x32xf32>
    %cst_29 = arith.constant 9.99999974E-6 : f32
    %52 = vector.broadcast %cst_29 : f32 to vector<2x1x32xf32>
    %53 = arith.addf %51, %52 : vector<2x1x32xf32>
    %54 = math.rsqrt %53 : vector<2x1x32xf32>
    %55 = vector.shape_cast %8 : vector<1x32xf32> to vector<1x1x32xf32>
    %56 = vector.broadcast %55 : vector<1x1x32xf32> to vector<2x1x32xf32>
    %57 = arith.mulf %56, %54 : vector<2x1x32xf32>
    %58 = vector.broadcast %57 : vector<2x1x32xf32> to vector<2x16x32xf32>
    %59 = arith.mulf %44, %58 : vector<2x16x32xf32>
    %60 = vector.shape_cast %9 : vector<1x32xf32> to vector<1x1x32xf32>
    %61 = vector.broadcast %60 : vector<1x1x32xf32> to vector<2x16x32xf32>
    %62 = arith.addf %59, %61 : vector<2x16x32xf32>
    %cst_30 = arith.constant 5.000000e-01 : f32
    %63 = vector.broadcast %cst_30 : f32 to vector<2x16x32xf32>
    %64 = arith.mulf %63, %62 : vector<2x16x32xf32>
    %65 = math.tanh %64 : vector<2x16x32xf32>
    %cst_31 = arith.constant 5.000000e-01 : f32
    %66 = vector.broadcast %cst_31 : f32 to vector<2x16x32xf32>
    %67 = arith.mulf %66, %65 : vector<2x16x32xf32>
    %cst_32 = arith.constant 5.000000e-01 : f32
    %68 = vector.broadcast %cst_32 : f32 to vector<2x16x32xf32>
    %69 = arith.addf %67, %68 : vector<2x16x32xf32>
    %70 = arith.mulf %62, %69 : vector<2x16x32xf32>
    %71 = vector.extract_strided_slice %1 {offsets = [0, 0, 0], sizes = [2, 1, 32], strides = [1, 1, 1]} : vector<2x2x32xf32> to vector<2x1x32xf32>
    %72 = vector.broadcast %71 : vector<2x1x32xf32> to vector<2x16x32xf32>
    %73 = arith.mulf %70, %72 : vector<2x16x32xf32>
    %74 = vector.extract_strided_slice %1 {offsets = [0, 1, 0], sizes = [2, 1, 32], strides = [1, 1, 1]} : vector<2x2x32xf32> to vector<2x1x32xf32>
    %75 = vector.broadcast %74 : vector<2x1x32xf32> to vector<2x16x32xf32>
    %76 = arith.addf %73, %75 : vector<2x16x32xf32>
    %cst_33 = arith.constant 5.000000e-01 : f32
    %77 = vector.broadcast %cst_33 : f32 to vector<2x16x32xf32>
    %78 = arith.mulf %77, %76 : vector<2x16x32xf32>
    %79 = math.tanh %78 : vector<2x16x32xf32>
    %cst_34 = arith.constant 5.000000e-01 : f32
    %80 = vector.broadcast %cst_34 : f32 to vector<2x16x32xf32>
    %81 = arith.mulf %80, %79 : vector<2x16x32xf32>
    %cst_35 = arith.constant 5.000000e-01 : f32
    %82 = vector.broadcast %cst_35 : f32 to vector<2x16x32xf32>
    %83 = arith.addf %81, %82 : vector<2x16x32xf32>
    %84 = arith.mulf %76, %83 : vector<2x16x32xf32>
    %cst_36 = arith.constant 0.000000e+00 : f32
    %85 = vector.broadcast %cst_36 : f32 to vector<2x1x32xf32>
    %86 = tpu.concatenate %85, %84, %85 in 1 : vector<2x1x32xf32>, vector<2x16x32xf32>, vector<2x1x32xf32> -> vector<2x18x32xf32>
    %cst_37 = arith.constant 0.000000e+00 : f32
    %87 = vector.broadcast %cst_37 : f32 to vector<32x32xf32>
    %88 = vector.extract_strided_slice %86 {offsets = [0, 0, 0], sizes = [2, 16, 32], strides = [1, 1, 1]} : vector<2x18x32xf32> to vector<2x16x32xf32>
    %89 = vector.shape_cast %88 : vector<2x16x32xf32> to vector<32x32xf32>
    %90 = vector.extract_strided_slice %6 {offsets = [0, 0, 0], sizes = [1, 32, 32], strides = [1, 1, 1]} : vector<3x32x32xf32> to vector<1x32x32xf32>
    %91 = vector.shape_cast %90 : vector<1x32x32xf32> to vector<32x32xf32>
    %cst_38 = arith.constant dense<0.000000e+00> : vector<32x32xf32>
    %92 = tpu.matmul %89, %91, %cst_38 {dimension_numbers = #tpu.dot_dimension_numbers<[1], [0], [0], [1], [0, 0, 1, 1], [], []>} : vector<32x32xf32>, vector<32x32xf32>, vector<32x32xf32> -> vector<32x32xf32>
    %93 = arith.addf %87, %92 : vector<32x32xf32>
    %94 = vector.extract_strided_slice %86 {offsets = [0, 1, 0], sizes = [2, 16, 32], strides = [1, 1, 1]} : vector<2x18x32xf32> to vector<2x16x32xf32>
    %95 = vector.shape_cast %94 : vector<2x16x32xf32> to vector<32x32xf32>
    %96 = vector.extract_strided_slice %6 {offsets = [1, 0, 0], sizes = [1, 32, 32], strides = [1, 1, 1]} : vector<3x32x32xf32> to vector<1x32x32xf32>
    %97 = vector.shape_cast %96 : vector<1x32x32xf32> to vector<32x32xf32>
    %cst_39 = arith.constant dense<0.000000e+00> : vector<32x32xf32>
    %98 = tpu.matmul %95, %97, %cst_39 {dimension_numbers = #tpu.dot_dimension_numbers<[1], [0], [0], [1], [0, 0, 1, 1], [], []>} : vector<32x32xf32>, vector<32x32xf32>, vector<32x32xf32> -> vector<32x32xf32>
    %99 = arith.addf %93, %98 : vector<32x32xf32>
    %100 = vector.extract_strided_slice %86 {offsets = [0, 2, 0], sizes = [2, 16, 32], strides = [1, 1, 1]} : vector<2x18x32xf32> to vector<2x16x32xf32>
    %101 = vector.shape_cast %100 : vector<2x16x32xf32> to vector<32x32xf32>
    %102 = vector.extract_strided_slice %6 {offsets = [2, 0, 0], sizes = [1, 32, 32], strides = [1, 1, 1]} : vector<3x32x32xf32> to vector<1x32x32xf32>
    %103 = vector.shape_cast %102 : vector<1x32x32xf32> to vector<32x32xf32>
    %cst_40 = arith.constant dense<0.000000e+00> : vector<32x32xf32>
    %104 = tpu.matmul %101, %103, %cst_40 {dimension_numbers = #tpu.dot_dimension_numbers<[1], [0], [0], [1], [0, 0, 1, 1], [], []>} : vector<32x32xf32>, vector<32x32xf32>, vector<32x32xf32> -> vector<32x32xf32>
    %105 = arith.addf %99, %104 : vector<32x32xf32>
    %106 = vector.broadcast %10 : vector<1x32xf32> to vector<32x32xf32>
    %107 = arith.addf %105, %106 : vector<32x32xf32>
    %108 = vector.shape_cast %107 : vector<32x32xf32> to vector<2x16x32xf32>
    %cst_41 = arith.constant dense<0.000000e+00> : vector<2x32xf32>
    %109 = vector.multi_reduction <add>, %108, %cst_41 [1] : vector<2x16x32xf32> to vector<2x32xf32>
    %cst_42 = arith.constant dense<0.000000e+00> : vector<2x16xf32>
    %110 = tpu.matmul %109, %2, %cst_42 {dimension_numbers = #tpu.dot_dimension_numbers<[1], [0], [0], [1], [0, 0, 1, 1], [], []>} : vector<2x32xf32>, vector<32x16xf32>, vector<2x16xf32> -> vector<2x16xf32>
    %cst_43 = arith.constant 3.200000e+01 : f32
    %111 = vector.broadcast %cst_43 : f32 to vector<2x16xf32>
    %112 = arith.divf %110, %111 : vector<2x16xf32>
    %cst_44 = arith.constant dense<0.000000e+00> : vector<2x32xf32>
    %113 = tpu.matmul %112, %3, %cst_44 {dimension_numbers = #tpu.dot_dimension_numbers<[1], [0], [0], [1], [0, 0, 1, 1], [], []>} : vector<2x16xf32>, vector<16x32xf32>, vector<2x32xf32> -> vector<2x32xf32>
    %114 = vector.shape_cast %113 : vector<2x32xf32> to vector<2x1x32xf32>
    %115 = vector.broadcast %114 : vector<2x1x32xf32> to vector<2x16x32xf32>
    %116 = arith.subf %108, %115 : vector<2x16x32xf32>
    %117 = arith.mulf %116, %116 : vector<2x16x32xf32>
    %cst_45 = arith.constant dense<0.000000e+00> : vector<2x32xf32>
    %118 = vector.multi_reduction <add>, %117, %cst_45 [1] : vector<2x16x32xf32> to vector<2x32xf32>
    %cst_46 = arith.constant dense<0.000000e+00> : vector<2x16xf32>
    %119 = tpu.matmul %118, %2, %cst_46 {dimension_numbers = #tpu.dot_dimension_numbers<[1], [0], [0], [1], [0, 0, 1, 1], [], []>} : vector<2x32xf32>, vector<32x16xf32>, vector<2x16xf32> -> vector<2x16xf32>
    %cst_47 = arith.constant 3.200000e+01 : f32
    %120 = vector.broadcast %cst_47 : f32 to vector<2x16xf32>
    %121 = arith.divf %119, %120 : vector<2x16xf32>
    %cst_48 = arith.constant dense<0.000000e+00> : vector<2x32xf32>
    %122 = tpu.matmul %121, %3, %cst_48 {dimension_numbers = #tpu.dot_dimension_numbers<[1], [0], [0], [1], [0, 0, 1, 1], [], []>} : vector<2x16xf32>, vector<16x32xf32>, vector<2x32xf32> -> vector<2x32xf32>
    %123 = vector.shape_cast %122 : vector<2x32xf32> to vector<2x1x32xf32>
    %cst_49 = arith.constant 9.99999974E-6 : f32
    %124 = vector.broadcast %cst_49 : f32 to vector<2x1x32xf32>
    %125 = arith.addf %123, %124 : vector<2x1x32xf32>
    %126 = math.rsqrt %125 : vector<2x1x32xf32>
    %127 = vector.shape_cast %11 : vector<1x32xf32> to vector<1x1x32xf32>
    %128 = vector.broadcast %127 : vector<1x1x32xf32> to vector<2x1x32xf32>
    %129 = arith.mulf %128, %126 : vector<2x1x32xf32>
    %130 = vector.broadcast %129 : vector<2x1x32xf32> to vector<2x16x32xf32>
    %131 = arith.mulf %116, %130 : vector<2x16x32xf32>
    %132 = vector.shape_cast %12 : vector<1x32xf32> to vector<1x1x32xf32>
    %133 = vector.broadcast %132 : vector<1x1x32xf32> to vector<2x16x32xf32>
    %134 = arith.addf %131, %133 : vector<2x16x32xf32>
    %cst_50 = arith.constant 5.000000e-01 : f32
    %135 = vector.broadcast %cst_50 : f32 to vector<2x16x32xf32>
    %136 = arith.mulf %135, %134 : vector<2x16x32xf32>
    %137 = math.tanh %136 : vector<2x16x32xf32>
    %cst_51 = arith.constant 5.000000e-01 : f32
    %138 = vector.broadcast %cst_51 : f32 to vector<2x16x32xf32>
    %139 = arith.mulf %138, %137 : vector<2x16x32xf32>
    %cst_52 = arith.constant 5.000000e-01 : f32
    %140 = vector.broadcast %cst_52 : f32 to vector<2x16x32xf32>
    %141 = arith.addf %139, %140 : vector<2x16x32xf32>
    %142 = arith.mulf %134, %141 : vector<2x16x32xf32>
    %143 = vector.extract_strided_slice %0 {offsets = [0, 0, 0], sizes = [2, 16, 32], strides = [1, 1, 1]} : vector<2x16x40xf32> to vector<2x16x32xf32>
    %144 = arith.addf %142, %143 : vector<2x16x32xf32>
    %c0_53 = arith.constant 0 : index
    %c0_54 = arith.constant 0 : index
    %c0_55 = arith.constant 0 : index
    %145 = vector.load %arg8[%c0_53, %c0_54, %c0_55] : memref<2x16x32xf32, #tpu.memory_space<vmem>>, vector<2x16x32xf32>
    tpu.vector_store %arg8[%c0_53, %c0_54, %c0_55], %144 {strides = array<i32>} : memref<2x16x32xf32, #tpu.memory_space<vmem>>, vector<2x16x32xf32>,
    return
  }
  func.func @transform_0(%arg0: i32) -> (i32, i32, i32) {
    %c0_i32 = arith.constant 0 : i32
    %c0_i32_0 = arith.constant 0 : i32
    %c0_i32_1 = arith.constant 0 : i32
    return %arg0, %c0_i32, %c0_i32_0 : i32, i32, i32
  }
  func.func @transform_1(%arg0: i32) -> (i32, i32, i32) {
    %c0_i32 = arith.constant 0 : i32
    %c0_i32_0 = arith.constant 0 : i32
    %c0_i32_1 = arith.constant 0 : i32
    return %arg0, %c0_i32, %c0_i32_0 : i32, i32, i32
  }
  func.func @transform_2(%arg0: i32) -> (i32, i32, i32) {
    %c0_i32 = arith.constant 0 : i32
    %c0_i32_0 = arith.constant 0 : i32
    %c0_i32_1 = arith.constant 0 : i32
    %c0_i32_2 = arith.constant 0 : i32
    return %c0_i32, %c0_i32_0, %c0_i32_1 : i32, i32, i32
  }
  func.func @transform_3(%arg0: i32) -> (i32, i32, i32) {
    %c0_i32 = arith.constant 0 : i32
    %c0_i32_0 = arith.constant 0 : i32
    %c0_i32_1 = arith.constant 0 : i32
    %c0_i32_2 = arith.constant 0 : i32
    return %c0_i32, %c0_i32_0, %c0_i32_1 : i32, i32, i32
  }
  func.func @transform_4(%arg0: i32) -> (i32, i32) {
    %c0_i32 = arith.constant 0 : i32
    %c0_i32_0 = arith.constant 0 : i32
    %c0_i32_1 = arith.constant 0 : i32
    return %c0_i32, %c0_i32_0 : i32, i32
  }
  func.func @transform_5(%arg0: i32) -> (i32, i32) {
    %c0_i32 = arith.constant 0 : i32
    %c0_i32_0 = arith.constant 0 : i32
    %c0_i32_1 = arith.constant 0 : i32
    return %c0_i32, %c0_i32_0 : i32, i32
  }
  func.func @transform_6(%arg0: i32) -> (i32, i32) {
    %c0_i32 = arith.constant 0 : i32
    %c0_i32_0 = arith.constant 0 : i32
    %c0_i32_1 = arith.constant 0 : i32
    return %c0_i32, %c0_i32_0 : i32, i32
  }
  func.func @transform_7(%arg0: i32) -> (i32, i32, i32) {
    %c0_i32 = arith.constant 0 : i32
    %c0_i32_0 = arith.constant 0 : i32
    %c0_i32_1 = arith.constant 0 : i32
    return %arg0, %c0_i32, %c0_i32_0 : i32, i32, i32
  }
}

</mosaic_0001>

<bundles_post_ra>
// kernel: tpu_custom_call.1
= control target key start
LH: loop header
LB: loop body
LE: loop exit
PB: predicated region body
PF: predicated region fallthrough
CT: control target
= control target key end

     0   :  { %vm71_vm0 = vcmask 1040384   ;;  %vm176_vm1 = vcmask 1045504   ;;  %s1552_s0 = inlined_call_operand.vmem [shape: f32[2,16,40], index: 0, kind: input, shape index: {}]   ;;  %s1553_s1 = inlined_call_operand.vmem [shape: f32[2,2,32], index: 1, kind: input, shape index: {}]   ;;  %s1554_s2 = inlined_call_operand.vmem [shape: f32[3,40,32], index: 2, kind: input, shape index: {}]   ;;  %s1555_s3 = inlined_call_operand.vmem [shape: f32[3,32,32], index: 3, kind: input, shape index: {}]   ;;  %s1556_s4 = inlined_call_operand.vmem [shape: f32[6,32], index: 4, kind: input, shape index: {}]   ;;  %s1557_s5 = inlined_call_operand.vmem [shape: f32[32,16], index: 5, kind: input, shape index: {}]   ;;  %s1558_s6 = inlined_call_operand.vmem [shape: f32[16,32], index: 6, kind: input, shape index: {}]   ;;  %s1559_s7 = inlined_call_operand.hbm [shape: f32[2,512], index: 7, kind: output, shape index: {}]  }
   0x1   :  { %v54_v0 = vld [vmem:[%s1554_s2 + $0x70] sm:$0xff]  ;;  %v53_v1 = vld [vmem:[%s1554_s2 + $0x68] sm:$0xff]  ;;  %v44_v3 = vld [vmem:[%s1554_s2 + $0x20] sm:$0xff] }
   0x2   :  { %v49_v2 = vld [vmem:[%s1554_s2 + $0x48] sm:$0xff]  ;;  %206 = vmatpush.msra.mxu2 %v54_v0  ;;  %v48_v4 = vld [vmem:[%s1554_s2 + $0x40] sm:$0xff]  ;;  %158 = vmatpush.msra.mxu1 %v44_v3  ;;  %v43_v6 = vld [vmem:[%s1554_s2 + $0x18] sm:$0xff] }
   0x3   :  { %121 = vmatpush.msra.mxu0 %v49_v2  ;;  %v52_v5 = vld [vmem:[%s1554_s2 + $0x60] sm:$0xff]  ;;  %v47_v7 = vld [vmem:[%s1554_s2 + $0x38] sm:$0xff]  ;;  %v42_v8 = vld [vmem:[%s1554_s2 + $0x10] sm:$0xff] }
   0x4   :  { %207 = vmatpush.msra.mxu2 %v53_v1  ;;  %v27_v9 = vld [vmem:[%s1552_s0] sm:$0xff]  ;;  %159 = vmatpush.msra.mxu1 %v43_v6  ;;  %v51_v10 = vld [vmem:[%s1554_s2 + $0x58] sm:$0xff]  ;;  %v28_v11 = vld [vmem:[%s1552_s0 + $0x8] sm:$0xff] }
   0x5   :  { %122 = vmatpush.msra.mxu0 %v48_v4  ;;  %v72_v12 = vrot.slane %v27_v9, 7  ;;  %v46_v13 = vld [vmem:[%s1554_s2 + $0x30] sm:$0xff]  ;;  %v73_v14 = vrot.slane %v28_v11, 7  ;;  %v41_v15 = vld [vmem:[%s1554_s2 + $0x8] sm:$0xff] }
   0x6   :  { %208 = vmatpush.msra.mxu2 %v52_v5  ;;  %160 = vmatpush.msra.mxu1 %v42_v8  ;;  %v50_v16 = vld [vmem:[%s1554_s2 + $0x50] sm:$0xff]  ;;  %v45_v18 = vld [vmem:[%s1554_s2 + $0x28] sm:$0xff] }
   0x7   :  { %123 = vmatpush.msra.mxu0 %v47_v7  ;;  %v82_v17 = vsel %vm71_vm0, 0.0, %v72_v12 }
   0x8   :  { %12 = vsyncpa [#allocation3], 0  ;;  %209 = vmatpush.msra.mxu2 %v51_v10  ;;  %v74_v19 = vsel %vm71_vm0, %v72_v12, %v73_v14  ;;  %v177_v20 = vrot.slane %v82_v17, 2  ;;  %v40_v21 = vld [vmem:[%s1554_s2] sm:$0xff]  ;;  %vm90_vm2 = vcmask 1046528   ;;  %v91_v22 = vrot.slane %v82_v17, 1  ;;  %161 = vmatpush.msra.mxu1 %v41_v15 }
   0x9   :  { %124 = vmatpush.msra.mxu0 %v46_v13  ;;  %vm101_vm3 = vcmask 326656   ;;  %v178_v23 = vrot.slane %v74_v19, 2  ;;  %v92_v24 = vrot.slane %v74_v19, 1  ;;  %v84_v25 = vsel %vm71_vm0, %v73_v14, 0.0  ;;  %v1270_v28 = vld [vmem:[%s1552_s0 + $0x10] sm:$0xff]  ;;  %v1275_v29 = vld [vmem:[%s1552_s0 + $0x18] sm:$0xff] }
   0xa   :  { %210 = vmatpush.msra.mxu2 %v50_v16  ;;  %162 = vmatpush.msra.mxu1 %v40_v21  ;;  %v180_v30 = vrot.slane %v84_v25, 2  ;;  %v94_v31 = vrot.slane %v84_v25, 1  ;;  %v75_v32 = vrot.slane %v1270_v28, 7  ;;  %v76_v33 = vrot.slane %v1275_v29, 7  ;;  %v1303_v54 = vld [vmem:[%s1557_s5 + $0x18] sm:$0xff]  ;;  %v1308_v55 = vld [vmem:[%s1557_s5 + $0x10] sm:$0xff] }
   0xb   :  { %125 = vmatpush.msra.mxu0 %v45_v18  ;;  %v179_v26 = vsel %vm176_vm1, %v177_v20, %v178_v23  ;;  %v93_v27 = vsel %vm90_vm2, %v91_v22, %v92_v24  ;;  %1067 = vmatmul.msk.f32.vlgmr.msra.gmra.mxu1 %vm101_vm3, %v82_v17  ;;  %v1315_v58 = vld [vmem:[%s1556_s4] sm:$0x3f]  ;;  %v1320_v59 = vld [vmem:[%s1557_s5 + $0x8] sm:$0xff]  ;;  %vm233_vm4 = vcmask 261120   ;;  %vm254_vm5 = vcmask 1041409   ;;  %s1168_s29 = smov 32  }
   0xc   :  { %1071 = vmatmul.msk.f32.vlgmr.msra.gmra.mxu2 %vm101_vm3, %v179_v26  ;;  %1063 = vmatmul.msk.f32.vlgmr.msra.gmra.mxu0 %vm101_vm3, %v93_v27  ;;  %v181_v34 = vsel %vm176_vm1, %v178_v23, %v180_v30  ;;  %v95_v35 = vsel %vm90_vm2, %v92_v24, %v94_v31  ;;  %v77_v36 = vsel %vm71_vm0, %v75_v32, %v76_v33  ;;  %v83_v37 = vsel %vm71_vm0, 0.0, %v75_v32  ;;  %v1327_v61 = vld [vmem:[%s1557_s5] sm:$0xff]  ;;  %v1339_v5 = vld [vmem:[%s1558_s6 + $0x8] sm:$0xff]  ;;  %s1169_s30 = smov 96   ;;  %s1170_s8 = smov [#allocation2]  }
   0xd   :  { %v182_v38 = vrot.slane %v83_v37, 2  ;;  %v183_v39 = vrot.slane %v77_v36, 2  ;;  %v96_v40 = vrot.slane %v83_v37, 1  ;;  %v97_v41 = vrot.slane %v77_v36, 1  ;;  %270 = vmatpush.msra.mxu3 %v1303_v54  ;;  %684 = vmatpush.msrb.mxu2 %v1303_v54  ;;  %v1344_v6 = vld [vmem:[%s1558_s6] sm:$0xff]  ;;  %s1052_s9 = sshll.u32 %s1170_s8, 4  ;;  %s1053_s9 = int_to_ptr.vmem [resolvable:$true] %s1052_s9 }
   0xe   :  { %v85_v44 = vsel %vm71_vm0, %v76_v33, 0.0  ;;  %v228_v63 = vperm.slane %v1315_v58, 0  ;;  %vm286_vm7 = vcmask 130048   ;;  %s1054_s12 = sshll.u32 %s1559_s7, 4  ;;  %s1055_s12 = int_to_ptr.hbm [resolvable:$true] %s1054_s12 }
   0xf   :  { %v184_v42 = vsel %vm176_vm1, %v182_v38, %v183_v39  ;;  %v98_v43 = vsel %vm90_vm2, %v96_v40, %v97_v41  ;;  %v185_v45 = vrot.slane %v85_v44, 2  ;;  %v99_v46 = vrot.slane %v85_v44, 1  ;;  %271 = vmatpush.msra.mxu3 %v1308_v55  ;;  %685 = vmatpush.msrb.mxu2 %v1308_v55 }
  0x10   :  { %v1164_v38 = vmov 32.0  }
  0x11   :  { %v186_v47 = vsel %vm176_vm1, %v183_v39, %v185_v45  ;;  %v100_v48 = vsel %vm90_vm2, %v97_v41, %v99_v46  ;;  %272 = vmatpush.msra.mxu3 %v1320_v59  ;;  %686 = vmatpush.msrb.mxu2 %v1320_v59  ;;  %1102 = vrcp.f32 %v1164_v38  ;;  %v55_v38 = vld [vmem:[%s1555_s3] sm:$0xff] }
  0x13   :  { %1068 = vmatmul.msk.f32.gmra.mxu1 %vm101_vm3, %v74_v19  ;;  %273 = vmatpush.msra.mxu3 %v1327_v61 }
  0x14   :  { %1072 = vmatmul.msk.f32.gmra.mxu2 %vm101_vm3, %v181_v34  ;;  %1064 = vmatmul.msk.f32.gmra.mxu0 %vm101_vm3, %v95_v35 }
  0x15   :  { %687 = vmatpush.msrb.mxu2 %v1327_v61  ;;  %304 = vmatpush.msrb.mxu3 %v1339_v5 }
  0x17   :  { %710 = vmatpush.msra.mxu2 %v1339_v5  ;;  %305 = vmatpush.msrb.mxu3 %v1344_v6  ;;  %v1103_v39 = vpop.eup %1102 }
  0x18   :  { %v279_v40 = vmul.f32 32.0, %v1103_v39  ;;  %vm283_vm6 = vweird.f32 %v1103_v39 }
  0x19   :  { %711 = vmatpush.msra.mxu2 %v1344_v6 }
  0x1a   :  { %v280_v41 = vsub.f32 1.0, %v279_v40 }
  0x1b   :  { %1069 = vmatmul.msk.f32.gmra.mxu1 %vm101_vm3, %v83_v37 }
  0x1c   :  { %1073 = vmatmul.msk.f32.gmra.mxu2 %vm101_vm3, %v184_v42  ;;  %1065 = vmatmul.msk.f32.gmra.mxu0 %vm101_vm3, %v98_v43  ;;  %v281_v42 = vmul.f32 %v1103_v39, %v280_v41 }
  0x1e   :  { %v282_v43 = vadd.f32 %v1103_v39, %v281_v42 }
  0x20   :  { %v1361_v44 = vsel %vm283_vm6, %v1103_v39, %v282_v43  ;;  %vm1019_vm6 = vcmask 523264  }
  0x23   :  { %1070 = vmatmul.msk.f32.gmra.mxu1 %vm101_vm3, %v77_v36 }
  0x24   :  { %1074 = vmatmul.msk.f32.gmra.mxu2 %vm101_vm3, %v186_v47  ;;  %1066 = vmatmul.msk.f32.gmra.mxu0 %vm101_vm3, %v100_v48 }
  0x88   :  { %v164_v50 = vpop.f32.mrf.mxu1 }
  0x89   :  { %v127_v49 = vpop.f32.mrf.mxu0 }
  0x8a   :  { %v165_v56 = vadd.f32 %v164_v50, %v127_v49 }
  0x8f   :  { %v212_v51 = vpop.f32.mrf.mxu2 }
  0x90   :  { %v167_v53 = vpop.f32.mrf.mxu1  ;;  %v224_v62 = vadd.f32 %v212_v51, %v165_v56 }
  0x91   :  { %v130_v52 = vpop.f32.mrf.mxu0 }
  0x92   :  { %v168_v57 = vadd.f32 %v167_v53, %v130_v52  ;;  %v229_v4 = vadd.f32 %v228_v63, %v224_v62 }
  0x94   :  { %v234_v9 = vsel %vm233_vm4, %v229_v4, 0.0 }
  0x97   :  { %v215_v60 = vpop.f32.mrf.mxu2 }
  0x98   :  { %v225_v0 = vadd.f32 %v215_v60, %v168_v57  ;;  %v170_v3 = vpop.f32.mrf.mxu1 }
  0x99   :  { %v133_v1 = vpop.f32.mrf.mxu0 }
  0x9a   :  { %v1332_v2 = vadd.f32 %v228_v63, %v225_v0  ;;  %v171_v10 = vadd.f32 %v170_v3, %v133_v1 }
  0x9c   :  { %v235_v7 = vsel %vm233_vm4, %v1332_v2, 0.0 }
  0x9d   :  { %v236_v11 = vadd.f32 %v235_v7, %v234_v9 }
  0x9f   :  { %v218_v8 = vpop.f32.mrf.mxu2  ;;  %v237_v16 = vrot.slane %v236_v11, 4 }
  0xa0   :  { %v173_v13 = vpop.f32.mrf.mxu1  ;;  %v226_v14 = vadd.f32 %v218_v8, %v171_v10 }
  0xa1   :  { %v136_v12 = vpop.f32.mrf.mxu0  ;;  %v238_v20 = vadd.f32 %v237_v16, %v236_v11 }
  0xa2   :  { %v174_v15 = vadd.f32 %v173_v13, %v136_v12  ;;  %v231_v18 = vadd.f32 %v228_v63, %v226_v14 }
  0xa3   :  { %v239_v24 = vrot.slane %v238_v20, 2 }
  0xa4   :  { %v243_v22 = vsel %vm233_vm4, %v231_v18, 0.0 }
  0xa5   :  { %v240_v30 = vadd.f32 %v239_v24, %v238_v20 }
  0xa7   :  { %v221_v17 = vpop.f32.mrf.mxu2  ;;  %v241_v32 = vrot.slane %v240_v30, 1 }
  0xa8   :  { %v227_v19 = vadd.f32 %v221_v17, %v174_v15 }
  0xa9   :  { %v242_v35 = vadd.f32 %v241_v32, %v240_v30  ;;  %v57_v30 = vld [vmem:[%s1555_s3 + $0x10] sm:$0xff]  ;;  %v62_v32 = vld [vmem:[%s1555_s3 + $0x38] sm:$0xff] }
  0xaa   :  { %v232_v21 = vadd.f32 %v228_v63, %v227_v19 }
  0xac   :  { %v244_v23 = vsel %vm233_vm4, %v232_v21, 0.0 }
  0xad   :  { %v245_v25 = vadd.f32 %v244_v23, %v243_v22 }
  0xaf   :  { %v246_v26 = vrot.slane %v245_v25, 4 }
  0xb1   :  { %v247_v27 = vadd.f32 %v246_v26, %v245_v25  ;;  %v58_v26 = vld [vmem:[%s1555_s3 + $0x18] sm:$0xff] }
  0xb2   :  { %576 = vmatpush.msrb.mxu0 %v58_v26 }
  0xb3   :  { %v248_v31 = vrot.slane %v247_v27, 2 }
  0xb4   :  { %577 = vmatpush.msrb.mxu0 %v57_v30 }
  0xb5   :  { %v249_v33 = vadd.f32 %v248_v31, %v247_v27  ;;  %v66_v27 = vld [vmem:[%s1555_s3 + $0x58] sm:$0xff]  ;;  %v65_v31 = vld [vmem:[%s1555_s3 + $0x50] sm:$0xff] }
  0xb6   :  { %623 = vmatpush.msrb.mxu1 %v66_v27 }
  0xb7   :  { %v250_v34 = vrot.slane %v249_v33, 1 }
  0xb8   :  { %624 = vmatpush.msrb.mxu1 %v65_v31 }
  0xb9   :  { %v251_v36 = vadd.f32 %v250_v34, %v249_v33  ;;  %v56_v34 = vld [vmem:[%s1555_s3 + $0x8] sm:$0xff] }
  0xba   :  { %578 = vmatpush.msrb.mxu0 %v56_v34 }
  0xbb   :  { %v255_v37 = vsel %vm254_vm5, %v251_v36, %v242_v35  ;;  %v64_v35 = vld [vmem:[%s1555_s3 + $0x48] sm:$0xff]  ;;  %v61_v36 = vld [vmem:[%s1555_s3 + $0x30] sm:$0xff] }
  0xbc   :  { %1075 = vmatmul.msk.f32.vlgmr.msra.gmra.mxu3 %vm233_vm4, %v255_v37  ;;  %v60_v37 = vld [vmem:[%s1555_s3 + $0x28] sm:$0xff]  ;;  %625 = vmatpush.msrb.mxu1 %v64_v35 }
  0xbd   :  { %359 = vmatpush.msra.mxu3 %v1303_v54  ;;  %579 = vmatpush.msrb.mxu0 %v55_v38 }
  0xbf   :  { %360 = vmatpush.msra.mxu3 %v1308_v55 }
  0xc1   :  { %361 = vmatpush.msra.mxu3 %v1320_v59 }
  0xc3   :  { %362 = vmatpush.msra.mxu3 %v1327_v61 }
 0x13f   :  { %v275_v45 = vpop.f32.mrf.mxu3 }
 0x140   :  { %v285_v46 = vmul.f32 %v1361_v44, %v275_v45 }
 0x142   :  { %1076 = vmatmul.msk.f32.vlgmr.msrb.gmra.mxu3 %vm286_vm7, %v285_v46 }
 0x143   :  { %385 = vmatpush.msrb.mxu3 %v1339_v5 }
 0x145   :  { %386 = vmatpush.msrb.mxu3 %v1344_v6 }
 0x1c5   :  { %v307_v47 = vpop.f32.mrf.mxu3 }
 0x1c6   :  { %v311_v48 = vrot.slane %v307_v47, 1  ;;  %v312_v49 = vperm.slane %v307_v47, 0 }
 0x1c8   :  { %v313_v50 = vperm.slane %v311_v48, 0  ;;  %v1367_v51 = vsub.f32 %v229_v4, %v312_v49  ;;  %v1370_v52 = vsub.f32 %v1332_v2, %v312_v49 }
 0x1ca   :  { %v1372_v53 = vsub.f32 %v231_v18, %v313_v50  ;;  %v1374_v56 = vsub.f32 %v232_v21, %v313_v50  ;;  %v320_v57 = vmul.f32 %v1367_v51, %v1367_v51  ;;  %v321_v60 = vmul.f32 %v1370_v52, %v1370_v52 }
 0x1cc   :  { %v322_v62 = vmul.f32 %v1372_v53, %v1372_v53  ;;  %v323_v63 = vmul.f32 %v1374_v56, %v1374_v56  ;;  %v324_v0 = vsel %vm233_vm4, %v320_v57, 0.0  ;;  %v325_v1 = vsel %vm233_vm4, %v321_v60, 0.0 }
 0x1cd   :  { %v326_v2 = vadd.f32 %v325_v1, %v324_v0 }
 0x1ce   :  { %v333_v3 = vsel %vm233_vm4, %v322_v62, 0.0  ;;  %v334_v4 = vsel %vm233_vm4, %v323_v63, 0.0 }
 0x1cf   :  { %v327_v7 = vrot.slane %v326_v2, 4  ;;  %v335_v8 = vadd.f32 %v334_v4, %v333_v3  ;;  %v430_v4 = vperm.slane %v1315_v58, 2 }
 0x1d1   :  { %v328_v9 = vadd.f32 %v327_v7, %v326_v2  ;;  %v336_v10 = vrot.slane %v335_v8, 4 }
 0x1d3   :  { %v329_v11 = vrot.slane %v328_v9, 2  ;;  %v337_v12 = vadd.f32 %v336_v10, %v335_v8 }
 0x1d5   :  { %v338_v13 = vrot.slane %v337_v12, 2  ;;  %v330_v14 = vadd.f32 %v329_v11, %v328_v9 }
 0x1d7   :  { %v331_v15 = vrot.slane %v330_v14, 1  ;;  %v339_v16 = vadd.f32 %v338_v13, %v337_v12 }
 0x1d9   :  { %v340_v17 = vrot.slane %v339_v16, 1  ;;  %v332_v18 = vadd.f32 %v331_v15, %v330_v14 }
 0x1db   :  { %v341_v19 = vadd.f32 %v340_v17, %v339_v16 }
 0x1dd   :  { %v344_v20 = vsel %vm254_vm5, %v341_v19, %v332_v18 }
 0x1de   :  { %1077 = vmatmul.msk.f32.vlgmr.msra.gmra.mxu3 %vm233_vm4, %v344_v20 }
 0x1df   :  { %539 = vmatpush.msra.mxu3 %v62_v32 }
 0x1e1   :  { %540 = vmatpush.msra.mxu3 %v61_v36 }
 0x1e3   :  { %541 = vmatpush.msra.mxu3 %v60_v37 }
 0x261   :  { %v364_v21 = vpop.f32.mrf.mxu3 }
 0x262   :  { %v367_v22 = vmul.f32 %v364_v21, %v1361_v44 }
 0x264   :  { %1078 = vmatmul.msk.f32.vlgmr.msrb.gmra.mxu3 %vm286_vm7, %v367_v22 }
 0x2e7   :  { %v388_v23 = vpop.f32.mrf.mxu3 }
 0x2e8   :  { %v392_v24 = vrot.slane %v388_v23, 1  ;;  %v394_v25 = vadd.f32 1e-05, %v388_v23 }
 0x2ea   :  { %v395_v33 = vadd.f32 1e-05, %v392_v24  ;;  %1104 = vrsqrt.f32 %v394_v25  ;;  %vm402_vm9 = vweird.f32 %v394_v25  ;;  %v32_v24 = vld [vmem:[%s1553_s1 + $0x2] sm:$0x3] }
 0x2eb   :  { %v456_v36 = vperm.slane %v32_v24, 0 }
 0x2ec   :  { %1106 = vrsqrt.f32 %v395_v33  ;;  %vm412_vm12 = vweird.f32 %v395_v33 }
 0x2f0   :  { %v1105_v39 = vpop.eup %1104 }
 0x2f1   :  { %v397_v40 = vmul.f32 %v1105_v39, %v394_v25  ;;  %vm403_vm8 = vweird.f32 %v1105_v39 }
 0x2f2   :  { %v1107_v41 = vpop.eup %1106  ;;  %vm404_vm11 = vmor %vm402_vm9, %vm403_vm8  ;;  %vm1039_vm8 = vcmask 1041408   ;;  %vm1041_vm9 = vcmask 1045508  }
 0x2f3   :  { %v398_v42 = vmul.f32 %v1105_v39, %v397_v40  ;;  %v407_v43 = vmul.f32 %v1107_v41, %v395_v33  ;;  %vm413_vm10 = vweird.f32 %v1107_v41 }
 0x2f4   :  { %vm414_vm13 = vmor %vm412_vm12, %vm413_vm10 }
 0x2f5   :  { %v399_v45 = vmul.f32 0.5, %v398_v42  ;;  %v408_v46 = vmul.f32 %v1107_v41, %v407_v43 }
 0x2f7   :  { %v400_v47 = vsub.f32 1.5, %v399_v45  ;;  %v409_v48 = vmul.f32 0.5, %v408_v46 }
 0x2f9   :  { %v401_v49 = vmul.f32 %v1105_v39, %v400_v47  ;;  %v410_v50 = vsub.f32 1.5, %v409_v48 }
 0x2fb   :  { %v405_v57 = vsel %vm404_vm11, %v1105_v39, %v401_v49  ;;  %v411_v60 = vmul.f32 %v1107_v41, %v410_v50 }
 0x2fc   :  { %v418_v62 = vperm.slane %v405_v57, 0 }
 0x2fd   :  { %v415_v63 = vsel %vm414_vm13, %v1107_v41, %v411_v60  ;;  %v462_v41 = vperm.slane %v32_v24, 1 }
 0x2fe   :  { %v419_v0 = vperm.slane %v415_v63, 0  ;;  %v422_v1 = vmul.f32 %v418_v62, %v1315_v58 }
 0x300   :  { %v423_v2 = vmul.f32 %v419_v0, %v1315_v58  ;;  %v424_v3 = vperm.slane %v422_v1, 1 }
 0x302   :  { %v425_v7 = vperm.slane %v423_v2, 1  ;;  %v426_v8 = vmul.f32 %v424_v3, %v1367_v51  ;;  %v427_v9 = vmul.f32 %v424_v3, %v1370_v52  ;;  %v59_v51 = vld [vmem:[%s1555_s3 + $0x20] sm:$0xff] }
 0x303   :  { %v63_v52 = vld [vmem:[%s1555_s3 + $0x40] sm:$0xff]  ;;  %542 = vmatpush.msra.mxu3 %v59_v51 }
 0x304   :  { %v429_v10 = vmul.f32 %v425_v7, %v1374_v56  ;;  %v432_v11 = vadd.f32 %v430_v4, %v427_v9  ;;  %v431_v12 = vadd.f32 %v430_v4, %v426_v8  ;;  %v428_v13 = vmul.f32 %v425_v7, %v1372_v53  ;;  %626 = vmatpush.msrb.mxu1 %v63_v52  ;;  %v31_v56 = vld [vmem:[%s1553_s1] sm:$0x3] }
 0x305   :  { %v455_v27 = vperm.slane %v31_v56, 0  ;;  %v461_v34 = vperm.slane %v31_v56, 1 }
 0x306   :  { %v436_v14 = vmul.f32 0.5, %v432_v11  ;;  %v435_v15 = vmul.f32 0.5, %v431_v12  ;;  %v433_v16 = vadd.f32 %v430_v4, %v428_v13  ;;  %v434_v17 = vadd.f32 %v430_v4, %v429_v10 }
 0x308   :  { %1108 = vtanh.f32 %v436_v14  ;;  %v437_v18 = vmul.f32 0.5, %v433_v16  ;;  %v438_v19 = vmul.f32 0.5, %v434_v17 }
 0x309   :  { %1110 = vtanh.f32 %v435_v15 }
 0x30a   :  { %1112 = vtanh.f32 %v437_v18 }
 0x30b   :  { %1114 = vtanh.f32 %v438_v19 }
 0x30e   :  { %v1109_v53 = vpop.eup %1108 }
 0x30f   :  { %v1111_v20 = vpop.eup %1110  ;;  %v444_v21 = vmul.f32 0.5, %v1109_v53 }
 0x310   :  { %v1113_v22 = vpop.eup %1112  ;;  %v443_v23 = vmul.f32 0.5, %v1111_v20 }
 0x311   :  { %v1115_v25 = vpop.eup %1114  ;;  %v448_v26 = vadd.f32 0.5, %v444_v21  ;;  %v445_v30 = vmul.f32 0.5, %v1113_v22 }
 0x312   :  { %v447_v31 = vadd.f32 0.5, %v443_v23  ;;  %v446_v32 = vmul.f32 0.5, %v1115_v25 }
 0x313   :  { %v452_v33 = vmul.f32 %v448_v26, %v432_v11  ;;  %v449_v35 = vadd.f32 0.5, %v445_v30 }
 0x314   :  { %v451_v37 = vmul.f32 %v447_v31, %v431_v12  ;;  %v450_v38 = vadd.f32 0.5, %v446_v32 }
 0x315   :  { %v458_v39 = vmul.f32 %v455_v27, %v452_v33  ;;  %v453_v40 = vmul.f32 %v449_v35, %v433_v16 }
 0x316   :  { %v457_v42 = vmul.f32 %v455_v27, %v451_v37  ;;  %v454_v43 = vmul.f32 %v450_v38, %v434_v17 }
 0x317   :  { %v464_v45 = vadd.f32 %v461_v34, %v458_v39  ;;  %v459_v46 = vmul.f32 %v456_v36, %v453_v40 }
 0x318   :  { %v463_v47 = vadd.f32 %v461_v34, %v457_v42  ;;  %v460_v48 = vmul.f32 %v456_v36, %v454_v43 }
 0x319   :  { %v468_v49 = vmul.f32 0.5, %v464_v45  ;;  %v465_v50 = vadd.f32 %v462_v41, %v459_v46 }
 0x31a   :  { %v467_v57 = vmul.f32 0.5, %v463_v47  ;;  %v466_v60 = vadd.f32 %v462_v41, %v460_v48 }
 0x31b   :  { %1116 = vtanh.f32 %v468_v49  ;;  %v469_v62 = vmul.f32 0.5, %v465_v50 }
 0x31c   :  { %1118 = vtanh.f32 %v467_v57  ;;  %v470_v63 = vmul.f32 0.5, %v466_v60 }
 0x31d   :  { %1120 = vtanh.f32 %v469_v62 }
 0x31e   :  { %1122 = vtanh.f32 %v470_v63 }
 0x321   :  { %v1117_v0 = vpop.eup %1116 }
 0x322   :  { %v1119_v1 = vpop.eup %1118  ;;  %v476_v2 = vmul.f32 0.5, %v1117_v0 }
 0x323   :  { %v1121_v3 = vpop.eup %1120  ;;  %v475_v4 = vmul.f32 0.5, %v1119_v1  ;;  %v644_v1 = vperm.slane %v1315_v58, 3 }
 0x324   :  { %v1123_v7 = vpop.eup %1122  ;;  %v480_v8 = vadd.f32 0.5, %v476_v2  ;;  %v477_v12 = vmul.f32 0.5, %v1121_v3 }
 0x325   :  { %v479_v9 = vadd.f32 0.5, %v475_v4  ;;  %v478_v13 = vmul.f32 0.5, %v1123_v7 }
 0x326   :  { %v484_v10 = vmul.f32 %v480_v8, %v464_v45  ;;  %v481_v18 = vadd.f32 0.5, %v477_v12 }
 0x327   :  { %v483_v11 = vmul.f32 %v479_v9, %v463_v47  ;;  %v482_v19 = vadd.f32 0.5, %v478_v13 }
 0x328   :  { %v492_v14 = vrot.slane %v484_v10, 7  ;;  %v485_v23 = vmul.f32 %v481_v18, %v465_v50 }
 0x329   :  { %v491_v15 = vrot.slane %v483_v11, 7  ;;  %v486_v24 = vmul.f32 %v482_v19, %v466_v60 }
 0x32a   :  { %v503_v22 = vsel %vm71_vm0, %v492_v14, 0.0  ;;  %v494_v27 = vrot.slane %v485_v23, 7 }
 0x32b   :  { %v493_v16 = vsel %vm71_vm0, %v491_v15, %v492_v14  ;;  %v501_v17 = vsel %vm71_vm0, 0.0, %v491_v15  ;;  %v512_v25 = vrot.slane %v503_v22, 1  ;;  %v596_v26 = vrot.slane %v503_v22, 2 }
 0x32c   :  { %v509_v51 = vrot.slane %v501_v17, 1  ;;  %1083 = vmatmul.msk.f32.vlgmr.msrb.gmra.mxu0 %vm233_vm4, %v501_v17  ;;  %v593_v52 = vrot.slane %v501_v17, 2  ;;  %v510_v53 = vrot.slane %v493_v16, 1  ;;  %v594_v56 = vrot.slane %v493_v16, 2 }
 0x32d   :  { %v495_v30 = vrot.slane %v486_v24, 7  ;;  %v502_v34 = vsel %vm71_vm0, 0.0, %v494_v27 }
 0x32e   :  { %v511_v20 = vsel %vm90_vm2, %v509_v51, %v510_v53  ;;  %v595_v21 = vsel %vm176_vm1, %v593_v52, %v594_v56  ;;  %v513_v31 = vsel %vm90_vm2, %v510_v53, %v512_v25  ;;  %v597_v32 = vsel %vm176_vm1, %v594_v56, %v596_v26 }
 0x32f   :  { %1079 = vmatmul.msk.f32.vlgmr.msra.gmra.mxu3 %vm233_vm4, %v511_v20  ;;  %1087 = vmatmul.msk.f32.vlgmr.msrb.gmra.mxu1 %vm233_vm4, %v595_v21  ;;  %v496_v33 = vsel %vm71_vm0, %v494_v27, %v495_v30  ;;  %v514_v35 = vrot.slane %v502_v34, 1  ;;  %v598_v36 = vrot.slane %v502_v34, 2  ;;  %v504_v41 = vsel %vm71_vm0, %v495_v30, 0.0 }
 0x330   :  { %v515_v37 = vrot.slane %v496_v33, 1  ;;  %v599_v38 = vrot.slane %v496_v33, 2  ;;  %v517_v42 = vrot.slane %v504_v41, 1  ;;  %v601_v43 = vrot.slane %v504_v41, 2 }
 0x332   :  { %v516_v39 = vsel %vm90_vm2, %v514_v35, %v515_v37  ;;  %v600_v40 = vsel %vm176_vm1, %v598_v36, %v599_v38  ;;  %v518_v45 = vsel %vm90_vm2, %v515_v37, %v517_v42  ;;  %v602_v46 = vsel %vm176_vm1, %v599_v38, %v601_v43 }
 0x334   :  { %1084 = vmatmul.msk.f32.gmra.mxu0 %vm233_vm4, %v493_v16 }
 0x337   :  { %1080 = vmatmul.msk.f32.gmra.mxu3 %vm233_vm4, %v513_v31  ;;  %1088 = vmatmul.msk.f32.gmra.mxu1 %vm233_vm4, %v597_v32 }
 0x33c   :  { %1085 = vmatmul.msk.f32.gmra.mxu0 %vm233_vm4, %v502_v34 }
 0x33f   :  { %1081 = vmatmul.msk.f32.gmra.mxu3 %vm233_vm4, %v516_v39  ;;  %1089 = vmatmul.msk.f32.gmra.mxu1 %vm233_vm4, %v600_v40 }
 0x344   :  { %1086 = vmatmul.msk.f32.gmra.mxu0 %vm233_vm4, %v496_v33 }
 0x347   :  { %1082 = vmatmul.msk.f32.gmra.mxu3 %vm233_vm4, %v518_v45  ;;  %1090 = vmatmul.msk.f32.gmra.mxu1 %vm233_vm4, %v602_v46 }
 0x3a9   :  { %v581_v47 = vpop.f32.mrf.mxu0 }
 0x3ac   :  { %v628_v48 = vpop.f32.mrf.mxu1 }
 0x3b1   :  { %v584_v50 = vpop.f32.mrf.mxu0 }
 0x3b2   :  { %v544_v49 = vpop.f32.mrf.mxu3 }
 0x3b3   :  { %v582_v60 = vadd.f32 %v581_v47, %v544_v49 }
 0x3b4   :  { %v631_v57 = vpop.f32.mrf.mxu1 }
 0x3b5   :  { %v640_v0 = vadd.f32 %v628_v48, %v582_v60 }
 0x3b7   :  { %v645_v7 = vadd.f32 %v644_v1, %v640_v0 }
 0x3b9   :  { %v587_v4 = vpop.f32.mrf.mxu0  ;;  %v649_v11 = vsel %vm233_vm4, %v645_v7, 0.0 }
 0x3ba   :  { %v547_v62 = vpop.f32.mrf.mxu3 }
 0x3bb   :  { %v585_v63 = vadd.f32 %v584_v50, %v547_v62 }
 0x3bc   :  { %v634_v8 = vpop.f32.mrf.mxu1 }
 0x3bd   :  { %v641_v2 = vadd.f32 %v631_v57, %v585_v63 }
 0x3bf   :  { %v646_v3 = vadd.f32 %v644_v1, %v641_v2 }
 0x3c1   :  { %v650_v10 = vsel %vm233_vm4, %v646_v3, 0.0  ;;  %v590_v16 = vpop.f32.mrf.mxu0 }
 0x3c2   :  { %v550_v9 = vpop.f32.mrf.mxu3  ;;  %v651_v13 = vadd.f32 %v650_v10, %v649_v11 }
 0x3c3   :  { %v588_v12 = vadd.f32 %v587_v4, %v550_v9 }
 0x3c4   :  { %v652_v15 = vrot.slane %v651_v13, 4  ;;  %v637_v19 = vpop.f32.mrf.mxu1 }
 0x3c5   :  { %v642_v14 = vadd.f32 %v634_v8, %v588_v12 }
 0x3c6   :  { %v653_v53 = vadd.f32 %v652_v15, %v651_v13 }
 0x3c7   :  { %v647_v51 = vadd.f32 %v644_v1, %v642_v14 }
 0x3c8   :  { %v654_v22 = vrot.slane %v653_v53, 2 }
 0x3c9   :  { %v658_v20 = vsel %vm233_vm4, %v647_v51, 0.0 }
 0x3ca   :  { %v553_v17 = vpop.f32.mrf.mxu3  ;;  %v655_v26 = vadd.f32 %v654_v22, %v653_v53 }
 0x3cb   :  { %v591_v18 = vadd.f32 %v590_v16, %v553_v17 }
 0x3cc   :  { %v656_v30 = vrot.slane %v655_v26, 1 }
 0x3cd   :  { %v643_v52 = vadd.f32 %v637_v19, %v591_v18 }
 0x3ce   :  { %v657_v33 = vadd.f32 %v656_v30, %v655_v26 }
 0x3cf   :  { %v648_v56 = vadd.f32 %v644_v1, %v643_v52 }
 0x3d1   :  { %v659_v21 = vsel %vm233_vm4, %v648_v56, 0.0 }
 0x3d2   :  { %v660_v23 = vadd.f32 %v659_v21, %v658_v20 }
 0x3d4   :  { %v661_v24 = vrot.slane %v660_v23, 4 }
 0x3d6   :  { %v662_v25 = vadd.f32 %v661_v24, %v660_v23 }
 0x3d8   :  { %v663_v27 = vrot.slane %v662_v25, 2 }
 0x3da   :  { %v664_v31 = vadd.f32 %v663_v27, %v662_v25 }
 0x3dc   :  { %v665_v32 = vrot.slane %v664_v31, 1 }
 0x3de   :  { %v666_v34 = vadd.f32 %v665_v32, %v664_v31 }
 0x3e0   :  { %v669_v35 = vsel %vm254_vm5, %v666_v34, %v657_v33  ;;  %v836_v33 = vperm.slane %v1315_v58, 5 }
 0x3e1   :  { %1091 = vmatmul.msk.f32.vlgmr.msrb.gmra.mxu2 %vm233_vm4, %v669_v35 }
 0x3e2   :  { %765 = vmatpush.msrb.mxu2 %v1303_v54 }
 0x3e4   :  { %766 = vmatpush.msrb.mxu2 %v1308_v55 }
 0x3e6   :  { %767 = vmatpush.msrb.mxu2 %v1320_v59 }
 0x3e8   :  { %768 = vmatpush.msrb.mxu2 %v1327_v61 }
 0x464   :  { %v689_v36 = vpop.f32.mrf.mxu2 }
 0x465   :  { %v692_v37 = vmul.f32 %v689_v36, %v1361_v44 }
 0x467   :  { %1092 = vmatmul.msk.f32.vlgmr.msra.gmra.mxu2 %vm286_vm7, %v692_v37 }
 0x468   :  { %791 = vmatpush.msra.mxu2 %v1339_v5 }
 0x46a   :  { %792 = vmatpush.msra.mxu2 %v1344_v6 }
 0x4ea   :  { %v713_v38 = vpop.f32.mrf.mxu2 }
 0x4eb   :  { %v717_v39 = vrot.slane %v713_v38, 1  ;;  %v718_v40 = vperm.slane %v713_v38, 0 }
 0x4ed   :  { %v719_v41 = vperm.slane %v717_v39, 0  ;;  %v1482_v54 = vsub.f32 %v645_v7, %v718_v40  ;;  %v1484_v55 = vsub.f32 %v646_v3, %v718_v40 }
 0x4ef   :  { %v1486_v59 = vsub.f32 %v647_v51, %v719_v41  ;;  %v1488_v61 = vsub.f32 %v648_v56, %v719_v41  ;;  %v726_v42 = vmul.f32 %v1482_v54, %v1482_v54  ;;  %v727_v5 = vmul.f32 %v1484_v55, %v1484_v55 }
 0x4f1   :  { %v728_v6 = vmul.f32 %v1486_v59, %v1486_v59  ;;  %v729_v43 = vmul.f32 %v1488_v61, %v1488_v61  ;;  %v730_v45 = vsel %vm233_vm4, %v726_v42, 0.0  ;;  %v731_v46 = vsel %vm233_vm4, %v727_v5, 0.0 }
 0x4f2   :  { %v732_v47 = vadd.f32 %v731_v46, %v730_v45 }
 0x4f3   :  { %v739_v48 = vsel %vm233_vm4, %v728_v6, 0.0  ;;  %v740_v49 = vsel %vm233_vm4, %v729_v43, 0.0 }
 0x4f4   :  { %v733_v50 = vrot.slane %v732_v47, 4  ;;  %v741_v57 = vadd.f32 %v740_v49, %v739_v48 }
 0x4f6   :  { %v734_v60 = vadd.f32 %v733_v50, %v732_v47  ;;  %v742_v62 = vrot.slane %v741_v57, 4 }
 0x4f8   :  { %v735_v63 = vrot.slane %v734_v60, 2  ;;  %v743_v0 = vadd.f32 %v742_v62, %v741_v57 }
 0x4fa   :  { %v744_v1 = vrot.slane %v743_v0, 2  ;;  %v736_v2 = vadd.f32 %v735_v63, %v734_v60 }
 0x4fc   :  { %v737_v3 = vrot.slane %v736_v2, 1  ;;  %v745_v4 = vadd.f32 %v744_v1, %v743_v0 }
 0x4fe   :  { %v746_v7 = vrot.slane %v745_v4, 1  ;;  %v738_v8 = vadd.f32 %v737_v3, %v736_v2  ;;  %v1166_v3 = vmov 1934713408  }
 0x500   :  { %v747_v9 = vadd.f32 %v746_v7, %v745_v4  ;;  %v891_v4 = vunpack.c.l.s4 %v1166_v3 }
 0x502   :  { %v750_v10 = vsel %vm254_vm5, %v747_v9, %v738_v8  ;;  %v1136_v8 = vld [vmem:[%s1552_s0] sm:$0xff]  ;;  %vm866_vm5 = vcmask 1047556  }
 0x503   :  { %1093 = vmatmul.msk.f32.vlgmr.msrb.gmra.mxu2 %vm233_vm4, %v750_v10 }
 0x586   :  { %v770_v11 = vpop.f32.mrf.mxu2 }
 0x587   :  { %v773_v12 = vmul.f32 %v770_v11, %v1361_v44  ;;  %v1137_v11 = vld [vmem:[%s1552_s0 + $0x8] sm:$0xff]  ;;  %s1167_s0 = smov 64  }
 0x589   :  { %1094 = vmatmul.msk.f32.vlgmr.msra.gmra.mxu2 %vm286_vm7, %v773_v12  ;;  %vm1021_vm7 = vcmask 785408  }
 0x60c   :  { %v794_v13 = vpop.f32.mrf.mxu2 }
 0x60d   :  { %v798_v14 = vrot.slane %v794_v13, 1  ;;  %v800_v15 = vadd.f32 1e-05, %v794_v13 }
 0x60f   :  { %v801_v16 = vadd.f32 1e-05, %v798_v14  ;;  %1124 = vrsqrt.f32 %v800_v15  ;;  %vm808_vm15 = vweird.f32 %v800_v15 }
 0x611   :  { %1126 = vrsqrt.f32 %v801_v16  ;;  %vm818_vm2 = vweird.f32 %v801_v16 }
 0x615   :  { %v1125_v17 = vpop.eup %1124 }
 0x616   :  { %v803_v18 = vmul.f32 %v1125_v17, %v800_v15  ;;  %vm809_vm14 = vweird.f32 %v1125_v17 }
 0x617   :  { %v1127_v19 = vpop.eup %1126  ;;  %vm810_vm1 = vmor %vm808_vm15, %vm809_vm14 }
 0x618   :  { %v804_v51 = vmul.f32 %v1125_v17, %v803_v18  ;;  %v813_v52 = vmul.f32 %v1127_v19, %v801_v16  ;;  %vm819_vm0 = vweird.f32 %v1127_v19  ;;  %v892_v18 = vunpack.c.0.s8 %v891_v4 }
 0x619   :  { %vm820_vm3 = vmor %vm818_vm2, %vm819_vm0 }
 0x61a   :  { %v805_v53 = vmul.f32 0.5, %v804_v51  ;;  %v814_v56 = vmul.f32 %v1127_v19, %v813_v52 }
 0x61c   :  { %v806_v20 = vsub.f32 1.5, %v805_v53  ;;  %v815_v21 = vmul.f32 0.5, %v814_v56 }
 0x61e   :  { %v807_v22 = vmul.f32 %v1125_v17, %v806_v20  ;;  %v816_v44 = vsub.f32 1.5, %v815_v21 }
 0x620   :  { %v811_v23 = vsel %vm810_vm1, %v1125_v17, %v807_v22  ;;  %v817_v24 = vmul.f32 %v1127_v19, %v816_v44 }
 0x621   :  { %v824_v25 = vperm.slane %v811_v23, 0 }
 0x622   :  { %v821_v26 = vsel %vm820_vm3, %v1127_v19, %v817_v24 }
 0x623   :  { %v825_v27 = vperm.slane %v821_v26, 0  ;;  %v828_v30 = vmul.f32 %v824_v25, %v1315_v58 }
 0x625   :  { %v829_v31 = vmul.f32 %v825_v27, %v1315_v58  ;;  %v830_v32 = vperm.slane %v828_v30, 4 }
 0x627   :  { %v831_v34 = vperm.slane %v829_v31, 4  ;;  %v832_v35 = vmul.f32 %v830_v32, %v1482_v54  ;;  %v833_v36 = vmul.f32 %v830_v32, %v1484_v55 }
 0x629   :  { %v834_v37 = vmul.f32 %v831_v34, %v1486_v59  ;;  %v835_v38 = vmul.f32 %v831_v34, %v1488_v61  ;;  %v837_v39 = vadd.f32 %v836_v33, %v832_v35  ;;  %v838_v40 = vadd.f32 %v836_v33, %v833_v36 }
 0x62a   :  { %v1165_v59 = vmov 1983009808  }
 0x62b   :  { %v839_v41 = vadd.f32 %v836_v33, %v834_v37  ;;  %v841_v42 = vmul.f32 0.5, %v837_v39  ;;  %v840_v5 = vadd.f32 %v836_v33, %v835_v38  ;;  %v842_v6 = vmul.f32 0.5, %v838_v40 }
 0x62c   :  { %v869_v48 = vunpack.c.l.s4 %v1165_v59 }
 0x62d   :  { %v843_v43 = vmul.f32 0.5, %v839_v41  ;;  %1128 = vtanh.f32 %v841_v42  ;;  %v844_v45 = vmul.f32 0.5, %v840_v5 }
 0x62e   :  { %1130 = vtanh.f32 %v842_v6  ;;  %v870_v2 = vunpack.c.0.s8 %v869_v48 }
 0x62f   :  { %1132 = vtanh.f32 %v843_v43 }
 0x630   :  { %1134 = vtanh.f32 %v844_v45 }
 0x633   :  { %v1129_v58 = vpop.eup %1128 }
 0x634   :  { %v1131_v54 = vpop.eup %1130  ;;  %v849_v46 = vmul.f32 0.5, %v1129_v58 }
 0x635   :  { %v1133_v55 = vpop.eup %1132  ;;  %v850_v47 = vmul.f32 0.5, %v1131_v54 }
 0x636   :  { %v1135_v61 = vpop.eup %1134  ;;  %v851_v49 = vmul.f32 0.5, %v1133_v55  ;;  %v853_v50 = vadd.f32 0.5, %v849_v46 }
 0x637   :  { %v852_v57 = vmul.f32 0.5, %v1135_v61  ;;  %v854_v60 = vadd.f32 0.5, %v850_v47 }
 0x638   :  { %v855_v62 = vadd.f32 0.5, %v851_v49  ;;  %v857_v63 = vmul.f32 %v853_v50, %v837_v39 }
 0x639   :  { %v856_v0 = vadd.f32 0.5, %v852_v57  ;;  %v858_v1 = vmul.f32 %v854_v60, %v838_v40 }
 0x63a   :  { %v859_v7 = vmul.f32 %v855_v62, %v839_v41  ;;  %v861_v9 = vadd.f32 %v1136_v8, %v857_v63 }
 0x63b   :  { %v860_v10 = vmul.f32 %v856_v0, %v840_v5  ;;  %v862_v12 = vadd.f32 %v1137_v11, %v858_v1 }
 0x63c   :  { %v863_v13 = vadd.f32 %v859_v7, %v1270_v28  ;;  %v865_v14 = vrot.slane %v861_v9, 4  ;;  %v871_v34 = vperm.slane %v861_v9, %v870_v2 }
 0x63d   :  { %v864_v15 = vadd.f32 %v860_v10, %v1275_v29  ;;  %v918_v16 = vrot.slane %v862_v12, 4  ;;  %v923_v17 = vperm.slane %v862_v12, %v870_v2 }
 0x63e   :  { %v867_v19 = vsel %vm866_vm5, 0.0, %v865_v14  ;;  %v876_v51 = vrot.slane %v863_v13, 4  ;;  %v881_v52 = vperm.slane %v863_v13, %v870_v2  ;;  %v888_v46 = vrot.slane %v871_v34, 4 }
 0x63f   :  { %v933_v53 = vperm.slane %v864_v15, %v870_v2  ;;  %v940_v56 = vrot.slane %v923_v17, 4  ;;  %v928_v20 = vrot.slane %v864_v15, 4  ;;  %v875_v21 = vperm.slane %v867_v19, %v870_v2 }
 0x640   :  { %v877_v22 = vsel %vm866_vm5, 0.0, %v876_v51  ;;  %v919_v44 = vsel %vm866_vm5, 0.0, %v918_v16  ;;  %v886_v23 = vrot.slane %v881_v52, 4  ;;  %v889_v50 = vsel %vm866_vm5, %v881_v52, %v888_v46 }
 0x641   :  { %v941_v28 = vsel %vm866_vm5, %v933_v53, %v940_v56  ;;  %v938_v24 = vrot.slane %v933_v53, 4  ;;  %v885_v29 = vperm.slane %v877_v22, %v870_v2  ;;  %v900_v25 = vrot.slane %v875_v21, 4 }
 0x642   :  { %v949_v26 = vperm.slane %v941_v28, %v892_v18  ;;  %v927_v27 = vperm.slane %v919_v44, %v870_v2  ;;  %v929_v30 = vsel %vm866_vm5, 0.0, %v928_v20  ;;  %v887_v38 = vsel %vm866_vm5, %v886_v23, %v871_v34 }
 0x643   :  { %v901_v31 = vsel %vm866_vm5, %v885_v29, %v900_v25  ;;  %v939_v32 = vsel %vm866_vm5, %v938_v24, %v923_v17  ;;  %v937_v33 = vperm.slane %v929_v30, %v870_v2  ;;  %v893_v5 = vperm.slane %v887_v38, %v892_v18 }
 0x644   :  { %999 = vrot.lane.b32.xlu2 %v949_v26, %s1167_s0  ;;  %v909_v35 = vperm.slane %v901_v31, %v892_v18  ;;  %v945_v36 = vperm.slane %v939_v32, %v892_v18  ;;  %v952_v37 = vrot.slane %v927_v27, 4  ;;  %v898_v6 = vrot.slane %v885_v29, 4 }
 0x645   :  { %v950_v40 = vrot.slane %v937_v33, 4  ;;  %v910_v54 = vrot.slane %v893_v5, 4  ;;  %v964_v48 = vrot.slane %v949_v26, 4  ;;  %v897_v62 = vperm.slane %v889_v50, %v892_v18 }
 0x646   :  { %987 = vrot.lane.b32.xlu1 %v909_v35, %s1167_s0  ;;  %v962_v39 = vrot.slane %v945_v36, 4  ;;  %v953_v41 = vsel %vm866_vm5, %v937_v33, %v952_v37  ;;  %v916_v43 = vrot.slane %v909_v35, 4  ;;  %v899_v59 = vsel %vm866_vm5, %v898_v6, %v875_v21 }
 0x647   :  { %v961_v45 = vperm.slane %v953_v41, %v892_v18  ;;  %v951_v58 = vsel %vm866_vm5, %v950_v40, %v927_v27  ;;  %v911_v61 = vsel %vm866_vm5, 0.0, %v910_v54  ;;  %v905_v49 = vperm.slane %v899_v59, %v892_v18 }
 0x648   :  { %v963_v42 = vsel %vm866_vm5, 0.0, %v962_v39  ;;  %v917_v55 = vsel %vm866_vm5, 0.0, %v916_v43  ;;  %v957_v47 = vperm.slane %v951_v58, %v892_v18  ;;  %v965_v60 = vsel %vm866_vm5, 0.0, %v964_v48 }
 0x649   :  { %995 = vrot.lane.b32.xlu0 %v963_v42, %s1168_s29  ;;  %v914_v63 = vrot.slane %v905_v49, 4  ;;  %v912_v1 = vrot.slane %v897_v62, 4  ;;  %v968_v4 = vrot.slane %v961_v45, 4 }
 0x64a   :  { %v966_v57 = vrot.slane %v957_v47, 4 }
 0x64b   :  { %v915_v2 = vsel %vm866_vm5, 0.0, %v914_v63  ;;  %v913_v3 = vsel %vm866_vm5, 0.0, %v912_v1  ;;  %v969_v7 = vsel %vm866_vm5, 0.0, %v968_v4 }
 0x64c   :  { %1011 = vrot.lane.b32.xlu2 %v961_v45, %s1167_s0  ;;  %v967_v0 = vsel %vm866_vm5, 0.0, %v966_v57 }
 0x64e   :  { %991 = vrot.lane.b32.xlu1 %v917_v55, %s1169_s30 }
 0x651   :  { %971 = vrot.lane.b32.xlu0 %v911_v61, %s1168_s29 }
 0x654   :  { %1003 = vrot.lane.b32.xlu2 %v965_v60, %s1169_s30 }
 0x656   :  { %1007 = vrot.lane.b32.xlu1 %v967_v0, %s1168_s29 }
 0x659   :  { %983 = vrot.lane.b32.xlu0 %v915_v2, %s1168_s29 }
 0x65c   :  { %979 = vrot.lane.b32.xlu2 %v913_v3, %s1169_s30 }
 0x65e   :  { %975 = vrot.lane.b32.xlu1 %v897_v62, %s1167_s0 }
 0x661   :  { %1015 = vrot.lane.b32.xlu0 %v969_v7, %s1169_s30 }
 0x69e   :  { %v1000_v8 = vpop.permute.xlu2 %999 }
 0x6a6   :  { %v1012_v11 = vpop.permute.xlu2 %1011 }
 0x6ae   :  { %v1004_v15 = vpop.permute.xlu2 %1003 }
 0x6b6   :  { %v980_v44 = vpop.permute.xlu2 %979 }
 0x6b8   :  { %v988_v9 = vpop.permute.xlu1 %987 }
 0x6bb   :  { %v996_v10 = vpop.permute.xlu0 %995 }
 0x6bc   :  { %v1026_v17 = vsel %vm233_vm4, %v945_v36, %v996_v10 }
 0x6bd   :  { %v1027_v19 = vsel %vm1019_vm6, %v1026_v17, %v1000_v8 }
 0x6be   :  { %v1028_v22 = vsel %vm1021_vm7, %v1027_v19, %v1004_v15 }
 0x6bf   :  { %v1037_v27 = vrot.slane %v1028_v22, 4 }
 0x6c0   :  { %v992_v12 = vpop.permute.xlu1 %991 }
 0x6c3   :  { %v972_v13 = vpop.permute.xlu0 %971 }
 0x6c4   :  { %v1018_v52 = vsel %vm233_vm4, %v893_v5, %v972_v13 }
 0x6c8   :  { %v1008_v14 = vpop.permute.xlu1 %1007 }
 0x6c9   :  { %v1029_v53 = vsel %vm233_vm4, %v957_v47, %v1008_v14 }
 0x6ca   :  { %v1030_v23 = vsel %vm1019_vm6, %v1029_v53, %v1012_v11 }
 0x6cb   :  { %v984_v16 = vpop.permute.xlu0 %983 }
 0x6cc   :  { %v1023_v18 = vsel %vm233_vm4, %v905_v49, %v984_v16  ;;  %vm1043_vm4 = vcmask 1043456  }
 0x6cd   :  { %v1024_v51 = vsel %vm1019_vm6, %v1023_v18, %v988_v9 }
 0x6ce   :  { %v1025_v21 = vsel %vm1021_vm7, %v1024_v51, %v992_v12 }
 0x6cf   :  { %v1036_v26 = vrot.slane %v1025_v21, 6 }
 0x6d0   :  { %v976_v56 = vpop.permute.xlu1 %975 }
 0x6d1   :  { %v1020_v20 = vsel %vm1019_vm6, %v1018_v52, %v976_v56 }
 0x6d2   :  { %v1022_v24 = vsel %vm1021_vm7, %v1020_v20, %v980_v44 }
 0x6d3   :  { %v1016_v28 = vpop.permute.xlu0 %1015  ;;  %v1040_v30 = vsel %vm1039_vm8, %v1022_v24, %v1036_v26 }
 0x6d4   :  { %v1031_v29 = vsel %vm1021_vm7, %v1030_v23, %v1016_v28 }
 0x6d5   :  { %v1038_v25 = vrot.slane %v1031_v29, 2 }
 0x6d7   :  { %v1042_v31 = vsel %vm1041_vm9, %v1037_v27, %v1038_v25 }
 0x6d8   :  { %v1044_v32 = vsel %vm1043_vm4, %v1040_v30, %v1042_v31 }
 0x6d9   :  { %1046 = vst [vmem:[#allocation2] sm:$0xff] %v1044_v32 }
 0x6da   :  { %1057 = dma.vmem_to_hbm [thread:$0]  %s1053_s9, 128, %s1055_s12, [#allocation3]  }
 0x6db   :  { %1162 = dma.done.wait [#allocation3], 128  }
 0x6dc   :  { %1163 = vsyncadd [#allocation3], 4294967168 }
 0x6dd   :  { %1062 = vsyncpa [#allocation3], 1 }

// kernel: tpu_custom_call.1
= control target key start
LH: loop header
LB: loop body
LE: loop exit
PB: predicated region body
PF: predicated region fallthrough
CT: control target
= control target key end

     0   :  { %vm71_vm0 = vcmask 1040384   ;;  %vm176_vm1 = vcmask 1045504   ;;  %s1346_s0 = inlined_call_operand.vmem [shape: f32[2,16,40], index: 0, kind: input, shape index: {}]   ;;  %s1347_s1 = inlined_call_operand.vmem [shape: f32[2,2,32], index: 1, kind: input, shape index: {}]   ;;  %s1348_s2 = inlined_call_operand.vmem [shape: f32[3,40,32], index: 2, kind: input, shape index: {}]   ;;  %s1349_s3 = inlined_call_operand.vmem [shape: f32[3,32,32], index: 3, kind: input, shape index: {}]   ;;  %s1350_s4 = inlined_call_operand.vmem [shape: f32[6,32], index: 4, kind: input, shape index: {}]   ;;  %s1351_s5 = inlined_call_operand.vmem [shape: f32[32,16], index: 5, kind: input, shape index: {}]   ;;  %s1352_s6 = inlined_call_operand.vmem [shape: f32[16,32], index: 6, kind: input, shape index: {}]   ;;  %s1353_s7 = inlined_call_operand.hbm [shape: f32[2,16,32], index: 7, kind: output, shape index: {}]  }
   0x1   :  { %v54_v0 = vld [vmem:[%s1348_s2 + $0x70] sm:$0xff]  ;;  %v53_v1 = vld [vmem:[%s1348_s2 + $0x68] sm:$0xff]  ;;  %v44_v3 = vld [vmem:[%s1348_s2 + $0x20] sm:$0xff] }
   0x2   :  { %v49_v2 = vld [vmem:[%s1348_s2 + $0x48] sm:$0xff]  ;;  %206 = vmatpush.msra.mxu2 %v54_v0  ;;  %v48_v4 = vld [vmem:[%s1348_s2 + $0x40] sm:$0xff]  ;;  %158 = vmatpush.msra.mxu1 %v44_v3  ;;  %v43_v6 = vld [vmem:[%s1348_s2 + $0x18] sm:$0xff] }
   0x3   :  { %121 = vmatpush.msra.mxu0 %v49_v2  ;;  %v52_v5 = vld [vmem:[%s1348_s2 + $0x60] sm:$0xff]  ;;  %v47_v7 = vld [vmem:[%s1348_s2 + $0x38] sm:$0xff]  ;;  %v42_v8 = vld [vmem:[%s1348_s2 + $0x10] sm:$0xff] }
   0x4   :  { %207 = vmatpush.msra.mxu2 %v53_v1  ;;  %v27_v9 = vld [vmem:[%s1346_s0] sm:$0xff]  ;;  %159 = vmatpush.msra.mxu1 %v43_v6  ;;  %v51_v10 = vld [vmem:[%s1348_s2 + $0x58] sm:$0xff]  ;;  %v1064_v11 = vld [vmem:[%s1346_s0 + $0x8] sm:$0xff] }
   0x5   :  { %122 = vmatpush.msra.mxu0 %v48_v4  ;;  %v72_v12 = vrot.slane %v27_v9, 7  ;;  %v46_v13 = vld [vmem:[%s1348_s2 + $0x30] sm:$0xff]  ;;  %v73_v14 = vrot.slane %v1064_v11, 7  ;;  %v41_v15 = vld [vmem:[%s1348_s2 + $0x8] sm:$0xff] }
   0x6   :  { %208 = vmatpush.msra.mxu2 %v52_v5  ;;  %160 = vmatpush.msra.mxu1 %v42_v8  ;;  %v50_v16 = vld [vmem:[%s1348_s2 + $0x50] sm:$0xff]  ;;  %v45_v18 = vld [vmem:[%s1348_s2 + $0x28] sm:$0xff] }
   0x7   :  { %123 = vmatpush.msra.mxu0 %v47_v7  ;;  %v82_v17 = vsel %vm71_vm0, 0.0, %v72_v12 }
   0x8   :  { %12 = vsyncpa [#allocation3], 0  ;;  %209 = vmatpush.msra.mxu2 %v51_v10  ;;  %v74_v19 = vsel %vm71_vm0, %v72_v12, %v73_v14  ;;  %v177_v20 = vrot.slane %v82_v17, 2  ;;  %v40_v21 = vld [vmem:[%s1348_s2] sm:$0xff]  ;;  %vm90_vm2 = vcmask 1046528   ;;  %v91_v22 = vrot.slane %v82_v17, 1  ;;  %161 = vmatpush.msra.mxu1 %v41_v15 }
   0x9   :  { %124 = vmatpush.msra.mxu0 %v46_v13  ;;  %vm101_vm3 = vcmask 326656   ;;  %v178_v23 = vrot.slane %v74_v19, 2  ;;  %v92_v24 = vrot.slane %v74_v19, 1  ;;  %v84_v25 = vsel %vm71_vm0, %v73_v14, 0.0  ;;  %v1090_v28 = vld [vmem:[%s1346_s0 + $0x10] sm:$0xff]  ;;  %v1095_v29 = vld [vmem:[%s1346_s0 + $0x18] sm:$0xff] }
   0xa   :  { %210 = vmatpush.msra.mxu2 %v50_v16  ;;  %162 = vmatpush.msra.mxu1 %v40_v21  ;;  %v180_v30 = vrot.slane %v84_v25, 2  ;;  %v94_v31 = vrot.slane %v84_v25, 1  ;;  %v75_v32 = vrot.slane %v1090_v28, 7  ;;  %v76_v33 = vrot.slane %v1095_v29, 7  ;;  %v1123_v54 = vld [vmem:[%s1351_s5 + $0x18] sm:$0xff]  ;;  %v1128_v55 = vld [vmem:[%s1351_s5 + $0x10] sm:$0xff] }
   0xb   :  { %125 = vmatpush.msra.mxu0 %v45_v18  ;;  %v179_v26 = vsel %vm176_vm1, %v177_v20, %v178_v23  ;;  %v93_v27 = vsel %vm90_vm2, %v91_v22, %v92_v24  ;;  %891 = vmatmul.msk.f32.vlgmr.msra.gmra.mxu1 %vm101_vm3, %v82_v17  ;;  %v1135_v58 = vld [vmem:[%s1350_s4] sm:$0x3f]  ;;  %v1140_v59 = vld [vmem:[%s1351_s5 + $0x8] sm:$0xff]  ;;  %vm233_vm4 = vcmask 261120   ;;  %vm254_vm5 = vcmask 1041409   ;;  %s875_s29 = sshll.u32 %s1353_s7, 4  ;;  %s876_s29 = int_to_ptr.hbm [resolvable:$true] %s875_s29 }
   0xc   :  { %895 = vmatmul.msk.f32.vlgmr.msra.gmra.mxu2 %vm101_vm3, %v179_v26  ;;  %887 = vmatmul.msk.f32.vlgmr.msra.gmra.mxu0 %vm101_vm3, %v93_v27  ;;  %v181_v34 = vsel %vm176_vm1, %v178_v23, %v180_v30  ;;  %v95_v35 = vsel %vm90_vm2, %v92_v24, %v94_v31  ;;  %v77_v36 = vsel %vm71_vm0, %v75_v32, %v76_v33  ;;  %v83_v37 = vsel %vm71_vm0, 0.0, %v75_v32  ;;  %v1147_v61 = vld [vmem:[%s1351_s5] sm:$0xff]  ;;  %v1159_v5 = vld [vmem:[%s1352_s6 + $0x8] sm:$0xff]  ;;  %s986_s7 = smov 128  }
   0xd   :  { %v182_v38 = vrot.slane %v83_v37, 2  ;;  %v183_v39 = vrot.slane %v77_v36, 2  ;;  %v96_v40 = vrot.slane %v83_v37, 1  ;;  %v97_v41 = vrot.slane %v77_v36, 1  ;;  %270 = vmatpush.msra.mxu3 %v1123_v54  ;;  %684 = vmatpush.msrb.mxu2 %v1123_v54  ;;  %v1164_v6 = vld [vmem:[%s1352_s6] sm:$0xff] }
   0xe   :  { %v85_v44 = vsel %vm71_vm0, %v76_v33, 0.0  ;;  %v228_v63 = vperm.slane %v1135_v58, 0  ;;  %vm286_vm7 = vcmask 130048  }
   0xf   :  { %v184_v42 = vsel %vm176_vm1, %v182_v38, %v183_v39  ;;  %v98_v43 = vsel %vm90_vm2, %v96_v40, %v97_v41  ;;  %v185_v45 = vrot.slane %v85_v44, 2  ;;  %v99_v46 = vrot.slane %v85_v44, 1  ;;  %271 = vmatpush.msra.mxu3 %v1128_v55  ;;  %685 = vmatpush.msrb.mxu2 %v1128_v55 }
  0x11   :  { %v186_v47 = vsel %vm176_vm1, %v183_v39, %v185_v45  ;;  %v100_v48 = vsel %vm90_vm2, %v97_v41, %v99_v46  ;;  %272 = vmatpush.msra.mxu3 %v1140_v59  ;;  %686 = vmatpush.msrb.mxu2 %v1140_v59  ;;  %v984_v39 = vmov 32.0  }
  0x12   :  { %923 = vrcp.f32 %v984_v39  ;;  %v60_v39 = vld [vmem:[%s1349_s3 + $0x28] sm:$0xff] }
  0x13   :  { %892 = vmatmul.msk.f32.gmra.mxu1 %vm101_vm3, %v74_v19  ;;  %273 = vmatpush.msra.mxu3 %v1147_v61 }
  0x14   :  { %896 = vmatmul.msk.f32.gmra.mxu2 %vm101_vm3, %v181_v34  ;;  %888 = vmatmul.msk.f32.gmra.mxu0 %vm101_vm3, %v95_v35 }
  0x15   :  { %687 = vmatpush.msrb.mxu2 %v1147_v61  ;;  %304 = vmatpush.msrb.mxu3 %v1159_v5 }
  0x17   :  { %710 = vmatpush.msra.mxu2 %v1159_v5  ;;  %305 = vmatpush.msrb.mxu3 %v1164_v6 }
  0x18   :  { %v924_v40 = vpop.eup %923 }
  0x19   :  { %711 = vmatpush.msra.mxu2 %v1164_v6  ;;  %v279_v41 = vmul.f32 32.0, %v924_v40  ;;  %vm283_vm6 = vweird.f32 %v924_v40 }
  0x1b   :  { %893 = vmatmul.msk.f32.gmra.mxu1 %vm101_vm3, %v83_v37 }
  0x1c   :  { %897 = vmatmul.msk.f32.gmra.mxu2 %vm101_vm3, %v184_v42  ;;  %889 = vmatmul.msk.f32.gmra.mxu0 %vm101_vm3, %v98_v43  ;;  %v280_v42 = vsub.f32 1.0, %v279_v41 }
  0x1e   :  { %v281_v43 = vmul.f32 %v924_v40, %v280_v42 }
  0x20   :  { %v282_v44 = vadd.f32 %v924_v40, %v281_v43 }
  0x22   :  { %v1181_v45 = vsel %vm283_vm6, %v924_v40, %v282_v44  ;;  %v55_v40 = vld [vmem:[%s1349_s3] sm:$0xff] }
  0x23   :  { %894 = vmatmul.msk.f32.gmra.mxu1 %vm101_vm3, %v77_v36 }
  0x24   :  { %898 = vmatmul.msk.f32.gmra.mxu2 %vm101_vm3, %v186_v47  ;;  %890 = vmatmul.msk.f32.gmra.mxu0 %vm101_vm3, %v100_v48 }
  0x88   :  { %v164_v50 = vpop.f32.mrf.mxu1 }
  0x89   :  { %v127_v49 = vpop.f32.mrf.mxu0 }
  0x8a   :  { %v165_v56 = vadd.f32 %v164_v50, %v127_v49 }
  0x8f   :  { %v212_v51 = vpop.f32.mrf.mxu2 }
  0x90   :  { %v167_v53 = vpop.f32.mrf.mxu1  ;;  %v224_v62 = vadd.f32 %v212_v51, %v165_v56 }
  0x91   :  { %v130_v52 = vpop.f32.mrf.mxu0 }
  0x92   :  { %v168_v57 = vadd.f32 %v167_v53, %v130_v52  ;;  %v229_v4 = vadd.f32 %v228_v63, %v224_v62 }
  0x94   :  { %v234_v9 = vsel %vm233_vm4, %v229_v4, 0.0 }
  0x97   :  { %v215_v60 = vpop.f32.mrf.mxu2 }
  0x98   :  { %v225_v0 = vadd.f32 %v215_v60, %v168_v57  ;;  %v170_v3 = vpop.f32.mrf.mxu1 }
  0x99   :  { %v133_v1 = vpop.f32.mrf.mxu0 }
  0x9a   :  { %v1152_v2 = vadd.f32 %v228_v63, %v225_v0  ;;  %v171_v10 = vadd.f32 %v170_v3, %v133_v1 }
  0x9c   :  { %v235_v7 = vsel %vm233_vm4, %v1152_v2, 0.0 }
  0x9d   :  { %v236_v12 = vadd.f32 %v235_v7, %v234_v9 }
  0x9f   :  { %v218_v8 = vpop.f32.mrf.mxu2  ;;  %v237_v17 = vrot.slane %v236_v12, 4 }
  0xa0   :  { %v173_v14 = vpop.f32.mrf.mxu1  ;;  %v226_v15 = vadd.f32 %v218_v8, %v171_v10 }
  0xa1   :  { %v136_v13 = vpop.f32.mrf.mxu0  ;;  %v238_v21 = vadd.f32 %v237_v17, %v236_v12 }
  0xa2   :  { %v174_v16 = vadd.f32 %v173_v14, %v136_v13  ;;  %v231_v19 = vadd.f32 %v228_v63, %v226_v15 }
  0xa3   :  { %v239_v25 = vrot.slane %v238_v21, 2 }
  0xa4   :  { %v243_v23 = vsel %vm233_vm4, %v231_v19, 0.0 }
  0xa5   :  { %v240_v31 = vadd.f32 %v239_v25, %v238_v21 }
  0xa7   :  { %v221_v18 = vpop.f32.mrf.mxu2  ;;  %v241_v33 = vrot.slane %v240_v31, 1 }
  0xa8   :  { %v227_v20 = vadd.f32 %v221_v18, %v174_v16 }
  0xa9   :  { %v242_v36 = vadd.f32 %v241_v33, %v240_v31  ;;  %v66_v31 = vld [vmem:[%s1349_s3 + $0x58] sm:$0xff]  ;;  %v65_v33 = vld [vmem:[%s1349_s3 + $0x50] sm:$0xff] }
  0xaa   :  { %v232_v22 = vadd.f32 %v228_v63, %v227_v20  ;;  %623 = vmatpush.msrb.mxu1 %v66_v31 }
  0xac   :  { %v244_v24 = vsel %vm233_vm4, %v232_v22, 0.0  ;;  %624 = vmatpush.msrb.mxu1 %v65_v33 }
  0xad   :  { %v245_v26 = vadd.f32 %v244_v24, %v243_v23 }
  0xaf   :  { %v246_v27 = vrot.slane %v245_v26, 4 }
  0xb1   :  { %v247_v30 = vadd.f32 %v246_v27, %v245_v26 }
  0xb3   :  { %v248_v32 = vrot.slane %v247_v30, 2 }
  0xb5   :  { %v249_v34 = vadd.f32 %v248_v32, %v247_v30  ;;  %v58_v30 = vld [vmem:[%s1349_s3 + $0x18] sm:$0xff]  ;;  %v57_v32 = vld [vmem:[%s1349_s3 + $0x10] sm:$0xff] }
  0xb6   :  { %576 = vmatpush.msrb.mxu0 %v58_v30 }
  0xb7   :  { %v250_v35 = vrot.slane %v249_v34, 1 }
  0xb8   :  { %577 = vmatpush.msrb.mxu0 %v57_v32 }
  0xb9   :  { %v251_v37 = vadd.f32 %v250_v35, %v249_v34  ;;  %v62_v34 = vld [vmem:[%s1349_s3 + $0x38] sm:$0xff] }
  0xbb   :  { %v255_v38 = vsel %vm254_vm5, %v251_v37, %v242_v36  ;;  %v56_v36 = vld [vmem:[%s1349_s3 + $0x8] sm:$0xff] }
  0xbc   :  { %899 = vmatmul.msk.f32.vlgmr.msra.gmra.mxu3 %vm233_vm4, %v255_v38  ;;  %v64_v37 = vld [vmem:[%s1349_s3 + $0x48] sm:$0xff]  ;;  %v61_v38 = vld [vmem:[%s1349_s3 + $0x30] sm:$0xff]  ;;  %578 = vmatpush.msrb.mxu0 %v56_v36 }
  0xbd   :  { %359 = vmatpush.msra.mxu3 %v1123_v54  ;;  %625 = vmatpush.msrb.mxu1 %v64_v37 }
  0xbe   :  { %579 = vmatpush.msrb.mxu0 %v55_v40 }
  0xbf   :  { %360 = vmatpush.msra.mxu3 %v1128_v55 }
  0xc1   :  { %361 = vmatpush.msra.mxu3 %v1140_v59 }
  0xc3   :  { %362 = vmatpush.msra.mxu3 %v1147_v61 }
 0x13f   :  { %v275_v46 = vpop.f32.mrf.mxu3 }
 0x140   :  { %v285_v47 = vmul.f32 %v1181_v45, %v275_v46 }
 0x142   :  { %900 = vmatmul.msk.f32.vlgmr.msrb.gmra.mxu3 %vm286_vm7, %v285_v47 }
 0x143   :  { %385 = vmatpush.msrb.mxu3 %v1159_v5 }
 0x145   :  { %386 = vmatpush.msrb.mxu3 %v1164_v6 }
 0x1c5   :  { %v307_v48 = vpop.f32.mrf.mxu3 }
 0x1c6   :  { %v311_v49 = vrot.slane %v307_v48, 1  ;;  %v312_v50 = vperm.slane %v307_v48, 0 }
 0x1c8   :  { %v313_v51 = vperm.slane %v311_v49, 0  ;;  %v1187_v52 = vsub.f32 %v229_v4, %v312_v50  ;;  %v1190_v53 = vsub.f32 %v1152_v2, %v312_v50 }
 0x1ca   :  { %v1192_v56 = vsub.f32 %v231_v19, %v313_v51  ;;  %v1194_v57 = vsub.f32 %v232_v22, %v313_v51  ;;  %v320_v60 = vmul.f32 %v1187_v52, %v1187_v52  ;;  %v321_v62 = vmul.f32 %v1190_v53, %v1190_v53 }
 0x1cc   :  { %v322_v63 = vmul.f32 %v1192_v56, %v1192_v56  ;;  %v323_v0 = vmul.f32 %v1194_v57, %v1194_v57  ;;  %v324_v1 = vsel %vm233_vm4, %v320_v60, 0.0  ;;  %v325_v2 = vsel %vm233_vm4, %v321_v62, 0.0 }
 0x1cd   :  { %v326_v3 = vadd.f32 %v325_v2, %v324_v1 }
 0x1ce   :  { %v333_v4 = vsel %vm233_vm4, %v322_v63, 0.0  ;;  %v334_v7 = vsel %vm233_vm4, %v323_v0, 0.0 }
 0x1cf   :  { %v327_v8 = vrot.slane %v326_v3, 4  ;;  %v335_v9 = vadd.f32 %v334_v7, %v333_v4 }
 0x1d1   :  { %v328_v10 = vadd.f32 %v327_v8, %v326_v3  ;;  %v336_v12 = vrot.slane %v335_v9, 4  ;;  %v430_v8 = vperm.slane %v1135_v58, 2 }
 0x1d3   :  { %v329_v13 = vrot.slane %v328_v10, 2  ;;  %v337_v14 = vadd.f32 %v336_v12, %v335_v9 }
 0x1d5   :  { %v338_v15 = vrot.slane %v337_v14, 2  ;;  %v330_v16 = vadd.f32 %v329_v13, %v328_v10 }
 0x1d7   :  { %v331_v17 = vrot.slane %v330_v16, 1  ;;  %v339_v18 = vadd.f32 %v338_v15, %v337_v14 }
 0x1d9   :  { %v340_v19 = vrot.slane %v339_v18, 1  ;;  %v332_v20 = vadd.f32 %v331_v17, %v330_v16 }
 0x1db   :  { %v341_v21 = vadd.f32 %v340_v19, %v339_v18 }
 0x1dd   :  { %v344_v22 = vsel %vm254_vm5, %v341_v21, %v332_v20 }
 0x1de   :  { %901 = vmatmul.msk.f32.vlgmr.msra.gmra.mxu3 %vm233_vm4, %v344_v22 }
 0x1df   :  { %539 = vmatpush.msra.mxu3 %v62_v34 }
 0x1e1   :  { %540 = vmatpush.msra.mxu3 %v61_v38 }
 0x1e3   :  { %541 = vmatpush.msra.mxu3 %v60_v39 }
 0x261   :  { %v364_v23 = vpop.f32.mrf.mxu3 }
 0x262   :  { %v367_v24 = vmul.f32 %v364_v23, %v1181_v45 }
 0x264   :  { %902 = vmatmul.msk.f32.vlgmr.msrb.gmra.mxu3 %vm286_vm7, %v367_v24 }
 0x2e7   :  { %v388_v25 = vpop.f32.mrf.mxu3 }
 0x2e8   :  { %v392_v26 = vrot.slane %v388_v25, 1  ;;  %v394_v27 = vadd.f32 1e-05, %v388_v25 }
 0x2ea   :  { %v395_v35 = vadd.f32 1e-05, %v392_v26  ;;  %925 = vrsqrt.f32 %v394_v27  ;;  %vm402_vm9 = vweird.f32 %v394_v27 }
 0x2ec   :  { %927 = vrsqrt.f32 %v395_v35  ;;  %vm412_vm12 = vweird.f32 %v395_v35 }
 0x2f0   :  { %v926_v41 = vpop.eup %925 }
 0x2f1   :  { %v397_v42 = vmul.f32 %v926_v41, %v394_v27  ;;  %vm403_vm8 = vweird.f32 %v926_v41  ;;  %v32_v27 = vld [vmem:[%s1347_s1 + $0x2] sm:$0x3] }
 0x2f2   :  { %v928_v43 = vpop.eup %927  ;;  %vm404_vm11 = vmor %vm402_vm9, %vm403_vm8  ;;  %v456_v39 = vperm.slane %v32_v27, 0 }
 0x2f3   :  { %v398_v44 = vmul.f32 %v926_v41, %v397_v42  ;;  %v407_v46 = vmul.f32 %v928_v43, %v395_v35  ;;  %vm413_vm10 = vweird.f32 %v928_v43 }
 0x2f4   :  { %vm414_vm13 = vmor %vm412_vm12, %vm413_vm10 }
 0x2f5   :  { %v399_v47 = vmul.f32 0.5, %v398_v44  ;;  %v408_v48 = vmul.f32 %v928_v43, %v407_v46  ;;  %v462_v44 = vperm.slane %v32_v27, 1 }
 0x2f7   :  { %v400_v49 = vsub.f32 1.5, %v399_v47  ;;  %v409_v50 = vmul.f32 0.5, %v408_v48 }
 0x2f9   :  { %v401_v51 = vmul.f32 %v926_v41, %v400_v49  ;;  %v410_v60 = vsub.f32 1.5, %v409_v50 }
 0x2fb   :  { %v405_v62 = vsel %vm404_vm11, %v926_v41, %v401_v51  ;;  %v411_v63 = vmul.f32 %v928_v43, %v410_v60 }
 0x2fc   :  { %v418_v0 = vperm.slane %v405_v62, 0 }
 0x2fd   :  { %v415_v1 = vsel %vm414_vm13, %v928_v43, %v411_v63 }
 0x2fe   :  { %v419_v2 = vperm.slane %v415_v1, 0  ;;  %v422_v3 = vmul.f32 %v418_v0, %v1135_v58 }
 0x300   :  { %v423_v4 = vmul.f32 %v419_v2, %v1135_v58  ;;  %v424_v7 = vperm.slane %v422_v3, 1 }
 0x302   :  { %v425_v9 = vperm.slane %v423_v4, 1  ;;  %v426_v10 = vmul.f32 %v424_v7, %v1187_v52  ;;  %v427_v12 = vmul.f32 %v424_v7, %v1190_v53  ;;  %v59_v52 = vld [vmem:[%s1349_s3 + $0x20] sm:$0xff] }
 0x303   :  { %v63_v53 = vld [vmem:[%s1349_s3 + $0x40] sm:$0xff]  ;;  %542 = vmatpush.msra.mxu3 %v59_v52 }
 0x304   :  { %v429_v13 = vmul.f32 %v425_v9, %v1194_v57  ;;  %v432_v14 = vadd.f32 %v430_v8, %v427_v12  ;;  %v431_v15 = vadd.f32 %v430_v8, %v426_v10  ;;  %v428_v16 = vmul.f32 %v425_v9, %v1192_v56  ;;  %626 = vmatpush.msrb.mxu1 %v63_v53  ;;  %v31_v57 = vld [vmem:[%s1347_s1] sm:$0x3]  ;;  %s985_s1 = smov [#allocation2]  }
 0x305   :  { %v455_v32 = vperm.slane %v31_v57, 0  ;;  %v461_v37 = vperm.slane %v31_v57, 1  ;;  %s873_s3 = sshll.u32 %s985_s1, 4  ;;  %s874_s3 = int_to_ptr.vmem [resolvable:$true] %s873_s3 }
 0x306   :  { %v436_v17 = vmul.f32 0.5, %v432_v14  ;;  %v435_v18 = vmul.f32 0.5, %v431_v15  ;;  %v433_v19 = vadd.f32 %v430_v8, %v428_v16  ;;  %v434_v20 = vadd.f32 %v430_v8, %v429_v13 }
 0x308   :  { %929 = vtanh.f32 %v436_v17  ;;  %v437_v21 = vmul.f32 0.5, %v433_v19  ;;  %v438_v22 = vmul.f32 0.5, %v434_v20 }
 0x309   :  { %931 = vtanh.f32 %v435_v18 }
 0x30a   :  { %933 = vtanh.f32 %v437_v21 }
 0x30b   :  { %935 = vtanh.f32 %v438_v22 }
 0x30e   :  { %v930_v56 = vpop.eup %929 }
 0x30f   :  { %v932_v23 = vpop.eup %931  ;;  %v444_v24 = vmul.f32 0.5, %v930_v56 }
 0x310   :  { %v934_v25 = vpop.eup %933  ;;  %v443_v26 = vmul.f32 0.5, %v932_v23 }
 0x311   :  { %v936_v30 = vpop.eup %935  ;;  %v448_v31 = vadd.f32 0.5, %v444_v24  ;;  %v445_v33 = vmul.f32 0.5, %v934_v25 }
 0x312   :  { %v447_v34 = vadd.f32 0.5, %v443_v26  ;;  %v446_v35 = vmul.f32 0.5, %v936_v30 }
 0x313   :  { %v452_v36 = vmul.f32 %v448_v31, %v432_v14  ;;  %v449_v38 = vadd.f32 0.5, %v445_v33 }
 0x314   :  { %v451_v40 = vmul.f32 %v447_v34, %v431_v15  ;;  %v450_v41 = vadd.f32 0.5, %v446_v35 }
 0x315   :  { %v458_v42 = vmul.f32 %v455_v32, %v452_v36  ;;  %v453_v43 = vmul.f32 %v449_v38, %v433_v19 }
 0x316   :  { %v457_v46 = vmul.f32 %v455_v32, %v451_v40  ;;  %v454_v47 = vmul.f32 %v450_v41, %v434_v20 }
 0x317   :  { %v464_v48 = vadd.f32 %v461_v37, %v458_v42  ;;  %v459_v49 = vmul.f32 %v456_v39, %v453_v43 }
 0x318   :  { %v463_v50 = vadd.f32 %v461_v37, %v457_v46  ;;  %v460_v51 = vmul.f32 %v456_v39, %v454_v47 }
 0x319   :  { %v468_v60 = vmul.f32 0.5, %v464_v48  ;;  %v465_v62 = vadd.f32 %v462_v44, %v459_v49 }
 0x31a   :  { %v467_v63 = vmul.f32 0.5, %v463_v50  ;;  %v466_v0 = vadd.f32 %v462_v44, %v460_v51 }
 0x31b   :  { %937 = vtanh.f32 %v468_v60  ;;  %v469_v1 = vmul.f32 0.5, %v465_v62 }
 0x31c   :  { %939 = vtanh.f32 %v467_v63  ;;  %v470_v2 = vmul.f32 0.5, %v466_v0 }
 0x31d   :  { %941 = vtanh.f32 %v469_v1 }
 0x31e   :  { %943 = vtanh.f32 %v470_v2 }
 0x321   :  { %v938_v3 = vpop.eup %937 }
 0x322   :  { %v940_v4 = vpop.eup %939  ;;  %v476_v7 = vmul.f32 0.5, %v938_v3 }
 0x323   :  { %v942_v8 = vpop.eup %941  ;;  %v475_v9 = vmul.f32 0.5, %v940_v4 }
 0x324   :  { %v944_v10 = vpop.eup %943  ;;  %v480_v12 = vadd.f32 0.5, %v476_v7  ;;  %v477_v16 = vmul.f32 0.5, %v942_v8  ;;  %v644_v7 = vperm.slane %v1135_v58, 3 }
 0x325   :  { %v479_v13 = vadd.f32 0.5, %v475_v9  ;;  %v478_v17 = vmul.f32 0.5, %v944_v10 }
 0x326   :  { %v484_v14 = vmul.f32 %v480_v12, %v464_v48  ;;  %v481_v22 = vadd.f32 0.5, %v477_v16 }
 0x327   :  { %v483_v15 = vmul.f32 %v479_v13, %v463_v50  ;;  %v482_v52 = vadd.f32 0.5, %v478_v17 }
 0x328   :  { %v492_v18 = vrot.slane %v484_v14, 7  ;;  %v485_v27 = vmul.f32 %v481_v22, %v465_v62 }
 0x329   :  { %v491_v19 = vrot.slane %v483_v15, 7  ;;  %v486_v30 = vmul.f32 %v482_v52, %v466_v0 }
 0x32a   :  { %v503_v26 = vsel %vm71_vm0, %v492_v18, 0.0  ;;  %v494_v33 = vrot.slane %v485_v27, 7 }
 0x32b   :  { %v493_v20 = vsel %vm71_vm0, %v491_v19, %v492_v18  ;;  %v501_v21 = vsel %vm71_vm0, 0.0, %v491_v19  ;;  %v512_v31 = vrot.slane %v503_v26, 1  ;;  %v596_v32 = vrot.slane %v503_v26, 2 }
 0x32c   :  { %v509_v53 = vrot.slane %v501_v21, 1  ;;  %907 = vmatmul.msk.f32.vlgmr.msrb.gmra.mxu0 %vm233_vm4, %v501_v21  ;;  %v593_v56 = vrot.slane %v501_v21, 2  ;;  %v510_v57 = vrot.slane %v493_v20, 1  ;;  %v594_v23 = vrot.slane %v493_v20, 2 }
 0x32d   :  { %v495_v34 = vrot.slane %v486_v30, 7  ;;  %v502_v38 = vsel %vm71_vm0, 0.0, %v494_v33 }
 0x32e   :  { %v511_v24 = vsel %vm90_vm2, %v509_v53, %v510_v57  ;;  %v595_v25 = vsel %vm176_vm1, %v593_v56, %v594_v23  ;;  %v513_v35 = vsel %vm90_vm2, %v510_v57, %v512_v31  ;;  %v597_v36 = vsel %vm176_vm1, %v594_v23, %v596_v32 }
 0x32f   :  { %903 = vmatmul.msk.f32.vlgmr.msra.gmra.mxu3 %vm233_vm4, %v511_v24  ;;  %911 = vmatmul.msk.f32.vlgmr.msrb.gmra.mxu1 %vm233_vm4, %v595_v25  ;;  %v496_v37 = vsel %vm71_vm0, %v494_v33, %v495_v34  ;;  %v514_v39 = vrot.slane %v502_v38, 1  ;;  %v598_v40 = vrot.slane %v502_v38, 2  ;;  %v504_v46 = vsel %vm71_vm0, %v495_v34, 0.0 }
 0x330   :  { %v515_v41 = vrot.slane %v496_v37, 1  ;;  %v599_v42 = vrot.slane %v496_v37, 2  ;;  %v517_v47 = vrot.slane %v504_v46, 1  ;;  %v601_v48 = vrot.slane %v504_v46, 2 }
 0x332   :  { %v516_v43 = vsel %vm90_vm2, %v514_v39, %v515_v41  ;;  %v600_v44 = vsel %vm176_vm1, %v598_v40, %v599_v42  ;;  %v518_v49 = vsel %vm90_vm2, %v515_v41, %v517_v47  ;;  %v602_v50 = vsel %vm176_vm1, %v599_v42, %v601_v48 }
 0x334   :  { %908 = vmatmul.msk.f32.gmra.mxu0 %vm233_vm4, %v493_v20 }
 0x337   :  { %904 = vmatmul.msk.f32.gmra.mxu3 %vm233_vm4, %v513_v35  ;;  %912 = vmatmul.msk.f32.gmra.mxu1 %vm233_vm4, %v597_v36 }
 0x33c   :  { %909 = vmatmul.msk.f32.gmra.mxu0 %vm233_vm4, %v502_v38 }
 0x33f   :  { %905 = vmatmul.msk.f32.gmra.mxu3 %vm233_vm4, %v516_v43  ;;  %913 = vmatmul.msk.f32.gmra.mxu1 %vm233_vm4, %v600_v44 }
 0x344   :  { %910 = vmatmul.msk.f32.gmra.mxu0 %vm233_vm4, %v496_v37 }
 0x347   :  { %906 = vmatmul.msk.f32.gmra.mxu3 %vm233_vm4, %v518_v49  ;;  %914 = vmatmul.msk.f32.gmra.mxu1 %vm233_vm4, %v602_v50 }
 0x3a9   :  { %v581_v51 = vpop.f32.mrf.mxu0 }
 0x3ac   :  { %v628_v60 = vpop.f32.mrf.mxu1 }
 0x3b1   :  { %v584_v63 = vpop.f32.mrf.mxu0 }
 0x3b2   :  { %v544_v62 = vpop.f32.mrf.mxu3 }
 0x3b3   :  { %v582_v1 = vadd.f32 %v581_v51, %v544_v62 }
 0x3b4   :  { %v631_v0 = vpop.f32.mrf.mxu1 }
 0x3b5   :  { %v640_v4 = vadd.f32 %v628_v60, %v582_v1 }
 0x3b7   :  { %v645_v12 = vadd.f32 %v644_v7, %v640_v4 }
 0x3b9   :  { %v587_v10 = vpop.f32.mrf.mxu0  ;;  %v649_v16 = vsel %vm233_vm4, %v645_v12, 0.0 }
 0x3ba   :  { %v547_v2 = vpop.f32.mrf.mxu3 }
 0x3bb   :  { %v585_v3 = vadd.f32 %v584_v63, %v547_v2 }
 0x3bc   :  { %v634_v13 = vpop.f32.mrf.mxu1 }
 0x3bd   :  { %v641_v8 = vadd.f32 %v631_v0, %v585_v3 }
 0x3bf   :  { %v646_v9 = vadd.f32 %v644_v7, %v641_v8 }
 0x3c1   :  { %v650_v15 = vsel %vm233_vm4, %v646_v9, 0.0  ;;  %v590_v21 = vpop.f32.mrf.mxu0 }
 0x3c2   :  { %v550_v14 = vpop.f32.mrf.mxu3  ;;  %v651_v18 = vadd.f32 %v650_v15, %v649_v16 }
 0x3c3   :  { %v588_v17 = vadd.f32 %v587_v10, %v550_v14 }
 0x3c4   :  { %v652_v20 = vrot.slane %v651_v18, 4  ;;  %v637_v53 = vpop.f32.mrf.mxu1 }
 0x3c5   :  { %v642_v19 = vadd.f32 %v634_v13, %v588_v17 }
 0x3c6   :  { %v653_v23 = vadd.f32 %v652_v20, %v651_v18 }
 0x3c7   :  { %v647_v56 = vadd.f32 %v644_v7, %v642_v19 }
 0x3c8   :  { %v654_v27 = vrot.slane %v653_v23, 2 }
 0x3c9   :  { %v658_v25 = vsel %vm233_vm4, %v647_v56, 0.0 }
 0x3ca   :  { %v553_v22 = vpop.f32.mrf.mxu3  ;;  %v655_v33 = vadd.f32 %v654_v27, %v653_v23 }
 0x3cb   :  { %v591_v52 = vadd.f32 %v590_v21, %v553_v22 }
 0x3cc   :  { %v656_v35 = vrot.slane %v655_v33, 1 }
 0x3cd   :  { %v643_v57 = vadd.f32 %v637_v53, %v591_v52 }
 0x3ce   :  { %v657_v38 = vadd.f32 %v656_v35, %v655_v33 }
 0x3cf   :  { %v648_v24 = vadd.f32 %v644_v7, %v643_v57 }
 0x3d1   :  { %v659_v26 = vsel %vm233_vm4, %v648_v24, 0.0 }
 0x3d2   :  { %v660_v30 = vadd.f32 %v659_v26, %v658_v25 }
 0x3d4   :  { %v661_v31 = vrot.slane %v660_v30, 4 }
 0x3d6   :  { %v662_v32 = vadd.f32 %v661_v31, %v660_v30 }
 0x3d8   :  { %v663_v34 = vrot.slane %v662_v32, 2 }
 0x3da   :  { %v664_v36 = vadd.f32 %v663_v34, %v662_v32 }
 0x3dc   :  { %v665_v37 = vrot.slane %v664_v36, 1 }
 0x3de   :  { %v666_v39 = vadd.f32 %v665_v37, %v664_v36 }
 0x3e0   :  { %v669_v40 = vsel %vm254_vm5, %v666_v39, %v657_v38  ;;  %v836_v39 = vperm.slane %v1135_v58, 5 }
 0x3e1   :  { %915 = vmatmul.msk.f32.vlgmr.msrb.gmra.mxu2 %vm233_vm4, %v669_v40 }
 0x3e2   :  { %765 = vmatpush.msrb.mxu2 %v1123_v54 }
 0x3e4   :  { %766 = vmatpush.msrb.mxu2 %v1128_v55 }
 0x3e6   :  { %767 = vmatpush.msrb.mxu2 %v1140_v59 }
 0x3e8   :  { %768 = vmatpush.msrb.mxu2 %v1147_v61 }
 0x464   :  { %v689_v41 = vpop.f32.mrf.mxu2 }
 0x465   :  { %v692_v42 = vmul.f32 %v689_v41, %v1181_v45 }
 0x467   :  { %916 = vmatmul.msk.f32.vlgmr.msra.gmra.mxu2 %vm286_vm7, %v692_v42 }
 0x468   :  { %791 = vmatpush.msra.mxu2 %v1159_v5 }
 0x46a   :  { %792 = vmatpush.msra.mxu2 %v1164_v6 }
 0x4ea   :  { %v713_v43 = vpop.f32.mrf.mxu2 }
 0x4eb   :  { %v717_v44 = vrot.slane %v713_v43, 1  ;;  %v718_v46 = vperm.slane %v713_v43, 0 }
 0x4ed   :  { %v719_v47 = vperm.slane %v717_v44, 0  ;;  %v1302_v54 = vsub.f32 %v645_v12, %v718_v46  ;;  %v1304_v55 = vsub.f32 %v646_v9, %v718_v46 }
 0x4ef   :  { %v1306_v59 = vsub.f32 %v647_v56, %v719_v47  ;;  %v1308_v61 = vsub.f32 %v648_v24, %v719_v47  ;;  %v726_v48 = vmul.f32 %v1302_v54, %v1302_v54  ;;  %v727_v5 = vmul.f32 %v1304_v55, %v1304_v55 }
 0x4f1   :  { %v728_v6 = vmul.f32 %v1306_v59, %v1306_v59  ;;  %v729_v49 = vmul.f32 %v1308_v61, %v1308_v61  ;;  %v730_v50 = vsel %vm233_vm4, %v726_v48, 0.0  ;;  %v731_v51 = vsel %vm233_vm4, %v727_v5, 0.0 }
 0x4f2   :  { %v732_v60 = vadd.f32 %v731_v51, %v730_v50 }
 0x4f3   :  { %v739_v62 = vsel %vm233_vm4, %v728_v6, 0.0  ;;  %v740_v63 = vsel %vm233_vm4, %v729_v49, 0.0 }
 0x4f4   :  { %v733_v0 = vrot.slane %v732_v60, 4  ;;  %v741_v1 = vadd.f32 %v740_v63, %v739_v62 }
 0x4f6   :  { %v734_v2 = vadd.f32 %v733_v0, %v732_v60  ;;  %v742_v3 = vrot.slane %v741_v1, 4 }
 0x4f8   :  { %v735_v4 = vrot.slane %v734_v2, 2  ;;  %v743_v7 = vadd.f32 %v742_v3, %v741_v1 }
 0x4fa   :  { %v744_v8 = vrot.slane %v743_v7, 2  ;;  %v736_v9 = vadd.f32 %v735_v4, %v734_v2 }
 0x4fc   :  { %v737_v10 = vrot.slane %v736_v9, 1  ;;  %v745_v12 = vadd.f32 %v744_v8, %v743_v7 }
 0x4fe   :  { %v746_v13 = vrot.slane %v745_v12, 1  ;;  %v738_v14 = vadd.f32 %v737_v10, %v736_v9  ;;  %v957_v9 = vld [vmem:[%s1346_s0] sm:$0xff]  ;;  %s987_s0 = smov 8  }
 0x500   :  { %v747_v15 = vadd.f32 %v746_v13, %v745_v12 }
 0x502   :  { %v750_v16 = vsel %vm254_vm5, %v747_v15, %v738_v14 }
 0x503   :  { %917 = vmatmul.msk.f32.vlgmr.msrb.gmra.mxu2 %vm233_vm4, %v750_v16 }
 0x586   :  { %v770_v17 = vpop.f32.mrf.mxu2 }
 0x587   :  { %v773_v18 = vmul.f32 %v770_v17, %v1181_v45 }
 0x589   :  { %918 = vmatmul.msk.f32.vlgmr.msra.gmra.mxu2 %vm286_vm7, %v773_v18 }
 0x60c   :  { %v794_v19 = vpop.f32.mrf.mxu2 }
 0x60d   :  { %v798_v20 = vrot.slane %v794_v19, 1  ;;  %v800_v21 = vadd.f32 1e-05, %v794_v19 }
 0x60f   :  { %v801_v22 = vadd.f32 1e-05, %v798_v20  ;;  %945 = vrsqrt.f32 %v800_v21  ;;  %vm808_vm15 = vweird.f32 %v800_v21 }
 0x611   :  { %947 = vrsqrt.f32 %v801_v22  ;;  %vm818_vm2 = vweird.f32 %v801_v22 }
 0x615   :  { %v946_v52 = vpop.eup %945 }
 0x616   :  { %v803_v53 = vmul.f32 %v946_v52, %v800_v21  ;;  %vm809_vm14 = vweird.f32 %v946_v52 }
 0x617   :  { %v948_v56 = vpop.eup %947  ;;  %vm810_vm1 = vmor %vm808_vm15, %vm809_vm14 }
 0x618   :  { %v804_v57 = vmul.f32 %v946_v52, %v803_v53  ;;  %v813_v23 = vmul.f32 %v948_v56, %v801_v22  ;;  %vm819_vm0 = vweird.f32 %v948_v56 }
 0x619   :  { %vm820_vm3 = vmor %vm818_vm2, %vm819_vm0 }
 0x61a   :  { %v805_v24 = vmul.f32 0.5, %v804_v57  ;;  %v814_v25 = vmul.f32 %v948_v56, %v813_v23 }
 0x61c   :  { %v806_v26 = vsub.f32 1.5, %v805_v24  ;;  %v815_v27 = vmul.f32 0.5, %v814_v25 }
 0x61e   :  { %v807_v30 = vmul.f32 %v946_v52, %v806_v26  ;;  %v816_v45 = vsub.f32 1.5, %v815_v27 }
 0x620   :  { %v811_v31 = vsel %vm810_vm1, %v946_v52, %v807_v30  ;;  %v817_v32 = vmul.f32 %v948_v56, %v816_v45 }
 0x621   :  { %v824_v33 = vperm.slane %v811_v31, 0 }
 0x622   :  { %v821_v34 = vsel %vm820_vm3, %v948_v56, %v817_v32 }
 0x623   :  { %v825_v35 = vperm.slane %v821_v34, 0  ;;  %v828_v36 = vmul.f32 %v824_v33, %v1135_v58 }
 0x625   :  { %v829_v37 = vmul.f32 %v825_v35, %v1135_v58  ;;  %v830_v38 = vperm.slane %v828_v36, 4 }
 0x627   :  { %v831_v40 = vperm.slane %v829_v37, 4  ;;  %v832_v41 = vmul.f32 %v830_v38, %v1302_v54  ;;  %v833_v42 = vmul.f32 %v830_v38, %v1304_v55 }
 0x629   :  { %v834_v43 = vmul.f32 %v831_v40, %v1306_v59  ;;  %v835_v44 = vmul.f32 %v831_v40, %v1308_v61  ;;  %v837_v46 = vadd.f32 %v836_v39, %v832_v41  ;;  %v838_v47 = vadd.f32 %v836_v39, %v833_v42 }
 0x62b   :  { %v839_v48 = vadd.f32 %v836_v39, %v834_v43  ;;  %v840_v5 = vadd.f32 %v836_v39, %v835_v44  ;;  %v841_v6 = vmul.f32 0.5, %v837_v46  ;;  %v842_v49 = vmul.f32 0.5, %v838_v47 }
 0x62d   :  { %v843_v50 = vmul.f32 0.5, %v839_v48  ;;  %v844_v51 = vmul.f32 0.5, %v840_v5  ;;  %949 = vtanh.f32 %v841_v6 }
 0x62e   :  { %951 = vtanh.f32 %v842_v49 }
 0x62f   :  { %953 = vtanh.f32 %v843_v50 }
 0x630   :  { %955 = vtanh.f32 %v844_v51 }
 0x633   :  { %v950_v58 = vpop.eup %949 }
 0x634   :  { %v952_v54 = vpop.eup %951  ;;  %v849_v60 = vmul.f32 0.5, %v950_v58 }
 0x635   :  { %v954_v55 = vpop.eup %953  ;;  %v850_v62 = vmul.f32 0.5, %v952_v54 }
 0x636   :  { %v956_v59 = vpop.eup %955  ;;  %v851_v63 = vmul.f32 0.5, %v954_v55  ;;  %v853_v61 = vadd.f32 0.5, %v849_v60 }
 0x637   :  { %v852_v0 = vmul.f32 0.5, %v956_v59  ;;  %v854_v1 = vadd.f32 0.5, %v850_v62 }
 0x638   :  { %v855_v2 = vadd.f32 0.5, %v851_v63  ;;  %v857_v3 = vmul.f32 %v853_v61, %v837_v46 }
 0x639   :  { %v856_v4 = vadd.f32 0.5, %v852_v0  ;;  %v858_v7 = vmul.f32 %v854_v1, %v838_v47 }
 0x63a   :  { %v859_v8 = vmul.f32 %v855_v2, %v839_v48  ;;  %v861_v10 = vadd.f32 %v957_v9, %v857_v3 }
 0x63b   :  { %v860_v12 = vmul.f32 %v856_v4, %v840_v5  ;;  %v862_v13 = vadd.f32 %v858_v7, %v1064_v11 }
 0x63c   :  { %v863_v14 = vadd.f32 %v859_v8, %v1090_v28  ;;  %865 = vst.msk [vmem:[#allocation2] sm:$0xff] %vm233_vm4, %v861_v10 }
 0x63d   :  { %v864_v15 = vadd.f32 %v860_v12, %v1095_v29  ;;  %866 = vst.msk [vmem:[#allocation2 + $0x8] sm:$0xff] %vm233_vm4, %v862_v13 }
 0x63e   :  { %867 = vst.msk [vmem:[#allocation2 + $0x10] sm:$0xff] %vm233_vm4, %v863_v14 }
 0x63f   :  { %868 = vst.msk [vmem:[#allocation2 + $0x18] sm:$0xff] %vm233_vm4, %v864_v15 }
 0x640   :  { %881 = dma.vmem_to_hbm [thread:$0]  %s874_s3, 512, %s876_s29, [#allocation3], %s986_s7, %s986_s7, %s987_s0  }
 0x641   :  { %982 = dma.done.wait [#allocation3], 512  }
 0x642   :  { %983 = vsyncadd [#allocation3], 4294966784 }
 0x643   :  { %886 = vsyncpa [#allocation3], 1 }

</bundles_post_ra>
